<compile_context>
chip_gen: v7x
topology: tpu7x:2x2x1
jax: 0.10.0
libtpu: 0.0.40
codegen_flags: <defaults>
</compile_context>

<pallas_src>
import jax
import jax.numpy as jnp
from jax import lax
from jax.experimental import pallas as pl
from jax.experimental.pallas import tpu as pltpu

EPS = 1e-5
LANES = 128                            # pad channel dims to the TPU lane width
MATMUL_DTYPE = jnp.float32             # jnp.bfloat16 for more MXU TF/s (small drift)
VMEM_LIMIT_BYTES = 48 * 1024 * 1024    # > default scoped (16/32 MiB), < v7x 64 MiB physical
TARGET_ROWS_PER_TILE = 1024            # ~512-2048 output rows/tile ~= HBM roofline sweet spot


def _round_up(x, m):
    return (x + m - 1) // m * m


def _pick_th(h, w):
    """Rows of H per tile: ~TARGET_ROWS_PER_TILE output pixels, and TH | H."""
    th = max(1, min(h, TARGET_ROWS_PER_TILE // max(w, 1)))
    while h % th:
        th -= 1
    return th


# ---------------------------------------------------------------------------
# Pass 1: 3x3 conv as 9 accumulated matmuls over shifted windows of the halo'd
#         slab, plus per-tile per-channel (sum, sum_sq) partials for BatchNorm.
# ---------------------------------------------------------------------------
def _conv_stats_kernel(xblk_ref, w_ref, y_ref, stats_ref):
    # xblk_ref : (1, TH+2, W+2, Cin_p)   halo'd, spatially zero-padded input slab
    # w_ref    : (9, Cin_p, Cout_p)      tap-major conv weights (grid-resident)
    # y_ref    : (1, TH, W, Cout_p)      pre-BN conv output tile (f32)
    # stats_ref: (1, 1, 2, Cout_p)       per-tile (sum, sum_sq) partials (f32)
    _, th, w, cout = y_ref.shape
    cin = xblk_ref.shape[-1]

    x = xblk_ref[0]                                           # (TH+2, W+2, Cin_p)
    acc = jnp.zeros((th * w, cout), jnp.float32)
    for dh in range(3):                                       # unrolled 9-tap conv
        for dw in range(3):
            patch = x[dh:dh + th, dw:dw + w, :].reshape(th * w, cin)
            acc = acc + jnp.dot(patch, w_ref[dh * 3 + dw],
                                preferred_element_type=jnp.float32)

    y_ref[...] = acc.reshape(1, th, w, cout).astype(y_ref.dtype)

    col_sum = jnp.sum(acc, axis=0, keepdims=True)             # (1, Cout_p)
    col_sq = jnp.sum(acc * acc, axis=0, keepdims=True)        # (1, Cout_p)
    stats_ref[...] = jnp.concatenate([col_sum, col_sq],
                                     axis=0).reshape(stats_ref.shape)


# ---------------------------------------------------------------------------
# Pass 2: elementwise BatchNorm (precomputed per-channel scale/shift) + ReLU.
# ---------------------------------------------------------------------------
def _bn_relu_kernel(y_ref, scale_ref, shift_ref, out_ref):
    # y_ref / out_ref: (1, TH, W, Cout_p);  scale/shift: (1, Cout_p)
    scale = scale_ref[...].reshape(1, 1, 1, -1)
    shift = shift_ref[...].reshape(1, 1, 1, -1)
    out_ref[...] = jnp.maximum(y_ref[...] * scale + shift,
                               0.0).astype(out_ref.dtype)


def _conv_bn_relu_stage(x_nhwc, w_col, gamma_p, beta_p, th):
    """x_nhwc: (N, H, W, Cin_p) channel-padded f32. Returns (N, H, W, Cout_p) f32."""
    n, h, w, cin = x_nhwc.shape
    cout = w_col.shape[-1]
    nhb = h // th

    # Spatial zero pad + halo row-block gather (2 extra rows per TH rows, not 9x im2col).
    xp = jnp.pad(x_nhwc, ((0, 0), (1, 1), (1, 1), (0, 0)))
    xblk = jnp.stack([xp[:, j * th:j * th + th + 2] for j in range(nhb)], axis=1)
    xblk = xblk.reshape(n * nhb, th + 2, w + 2, cin).astype(MATMUL_DTYPE)

    cparams = pltpu.CompilerParams(
        dimension_semantics=("parallel", "parallel"),
        vmem_limit_bytes=VMEM_LIMIT_BYTES)

    y, stats = pl.pallas_call(
        _conv_stats_kernel,
        out_shape=(jax.ShapeDtypeStruct((n, h, w, cout), jnp.float32),
                   jax.ShapeDtypeStruct((n, nhb, 2, cout), jnp.float32)),
        grid_spec=pltpu.PrefetchScalarGridSpec(
            num_scalar_prefetch=0,
            grid=(n, nhb),
            in_specs=[
                pl.BlockSpec((1, th + 2, w + 2, cin),
                             lambda i, j: (i * nhb + j, 0, 0, 0)),
                pl.BlockSpec((9, cin, cout), lambda i, j: (0, 0, 0)),
            ],
            out_specs=[
                pl.BlockSpec((1, th, w, cout), lambda i, j: (i, j, 0, 0)),
                pl.BlockSpec((1, 1, 2, cout), lambda i, j: (i, j, 0, 0)),
            ]),
        compiler_params=cparams,
    )(xblk, w_col)

    # Finalize BatchNorm statistics: tiny cross-tile reduction, all in f32.
    m_total = n * h * w
    s = jnp.sum(stats, axis=(0, 1))                           # (2, Cout_p)
    mean = s[0] / m_total
    var = jnp.maximum(s[1] / m_total - mean * mean, 0.0)      # clamp E[y^2]-mean^2
    inv_std = lax.rsqrt(var + EPS)
    scale = gamma_p * inv_std
    shift = beta_p - mean * scale

    out = pl.pallas_call(
        _bn_relu_kernel,
        out_shape=jax.ShapeDtypeStruct((n, h, w, cout), jnp.float32),
        grid_spec=pltpu.PrefetchScalarGridSpec(
            num_scalar_prefetch=0,
            grid=(n, nhb),
            in_specs=[
                pl.BlockSpec((1, th, w, cout), lambda i, j: (i, j, 0, 0)),
                pl.BlockSpec((1, cout), lambda i, j: (0, 0)),
                pl.BlockSpec((1, cout), lambda i, j: (0, 0)),
            ],
            out_specs=pl.BlockSpec((1, th, w, cout), lambda i, j: (i, j, 0, 0))),
        compiler_params=cparams,
    )(y, scale.reshape(1, cout), shift.reshape(1, cout))
    return out


def _weight_to_taps(w_oihw, cin_p, cout_p):
    """(Cout, Cin, 3, 3) -> (9, Cin_p, Cout_p); tap t = dh*3 + dw; zero padded."""
    cout, cin, kh, kw = w_oihw.shape
    wc = jnp.transpose(w_oihw, (2, 3, 1, 0)).reshape(kh * kw, cin, cout)
    wc = jnp.pad(wc, ((0, 0), (0, cin_p - cin), (0, cout_p - cout)))
    return wc.astype(MATMUL_DTYPE)


def _pad_channels_vec(v, cp, fill):
    return jnp.pad(v.astype(jnp.float32), (0, cp - v.shape[0]),
                   constant_values=fill)


@jax.jit
def double_conv(x_nchw, params):
    """Forward pass of DoubleConv. Input/output are NCHW like PyTorch."""
    n, c_in, h, w = x_nchw.shape
    c_out = params["w1"].shape[0]
    c1p = _round_up(c_in, LANES)
    c2p = _round_up(c_out, LANES)
    th = _pick_th(h, w)

    x = jnp.transpose(x_nchw, (0, 2, 3, 1))                   # NCHW -> NHWC
    x = jnp.pad(x, ((0, 0), (0, 0), (0, 0), (0, c1p - c_in)))  # lane-dense channels

    w1 = _weight_to_taps(params["w1"], c1p, c2p)
    w2 = _weight_to_taps(params["w2"], c2p, c2p)
    g1 = _pad_channels_vec(params["gamma1"], c2p, 1.0)
    b1 = _pad_channels_vec(params["beta1"], c2p, 0.0)
    g2 = _pad_channels_vec(params["gamma2"], c2p, 1.0)
    b2 = _pad_channels_vec(params["beta2"], c2p, 0.0)

    # TODO(synk): fuse stage-1's normalize+ReLU into stage-2's conv pass to save
    # one full activation HBM round trip (needs in-kernel masking of the spatial
    # zero-halo so BN(0) != 0 does not leak into the padding ring).
    a1 = _conv_bn_relu_stage(x, w1, g1, b1, th)
    a2 = _conv_bn_relu_stage(a1, w2, g2, b2, th)

    out = a2[..., :c_out]                                     # drop channel padding
    return jnp.transpose(out, (0, 3, 1, 2))                   # NHWC -> NCHW


def init_params(key, c_in, c_out):
    k1, k2 = jax.random.split(key)
    # Deterministic synthetic init (Kaiming-like scale); BN affine = identity
    # (gamma=1, beta=0), matching PyTorch defaults.
    w1 = jax.random.normal(k1, (c_out, c_in, 3, 3), jnp.float32) * (2.0 / (9 * c_in)) ** 0.5
    w2 = jax.random.normal(k2, (c_out, c_out, 3, 3), jnp.float32) * (2.0 / (9 * c_out)) ** 0.5
    return {
        "w1": w1,
        "gamma1": jnp.ones((c_out,), jnp.float32),
        "beta1": jnp.zeros((c_out,), jnp.float32),
        "w2": w2,
        "gamma2": jnp.ones((c_out,), jnp.float32),
        "beta2": jnp.zeros((c_out,), jnp.float32),
    }


def _reference_double_conv(x_nchw, params):
    """Pure-JAX/XLA reference with PyTorch training-mode BN forward semantics."""
    def conv(x, w):
        return lax.conv_general_dilated(
            x, w, window_strides=(1, 1), padding=((1, 1), (1, 1)),
            dimension_numbers=("NCHW", "OIHW", "NCHW"),
            precision=lax.Precision.HIGHEST)

    def bn_relu(y, g, b):
        mean = jnp.mean(y, axis=(0, 2, 3), keepdims=True)
        var = jnp.mean(jnp.square(y - mean), axis=(0, 2, 3), keepdims=True)
        y_hat = (y - mean) * lax.rsqrt(var + EPS)
        y_aff = y_hat * g.reshape(1, -1, 1, 1) + b.reshape(1, -1, 1, 1)
        return jnp.maximum(y_aff, 0.0)

    y = bn_relu(conv(x_nchw, params["w1"]), params["gamma1"], params["beta1"])
    return bn_relu(conv(y, params["w2"]), params["gamma2"], params["beta2"])


if __name__ == "__main__":
    key = jax.random.PRNGKey(0)
    kx, kp = jax.random.split(key)

    N, C_IN, C_OUT, H, W = 2, 4, 8, 16, 16
    x = jax.random.normal(kx, (N, C_IN, H, W), jnp.float32)    # NCHW, like PyTorch
    params = init_params(kp, C_IN, C_OUT)

    out = jax.block_until_ready(double_conv(x, params))
    assert out.shape == (N, C_OUT, H, W), out.shape

    ref = jax.block_until_ready(_reference_double_conv(x, params))
    max_err = float(jnp.max(jnp.abs(out - ref)))
    assert max_err < 2e-3, f"max abs err vs reference: {max_err}"

    print("KERNEL_OK")
</pallas_src>

<mosaic_0001>
module attributes {stable_mosaic.version = 11 : i64} {
  func.func @_conv_stats_kernel(%arg0: i32, %arg1: i32, %arg2: memref<1x18x18x128xf32, #tpu.memory_space<vmem>>, %arg3: memref<9x128x128xf32, #tpu.memory_space<vmem>>, %arg4: memref<1x16x16x128xf32, #tpu.memory_space<vmem>>, %arg5: memref<1x1x2x128xf32, #tpu.memory_space<vmem>>) attributes {dimension_semantics = [#tpu.dimension_semantics<parallel>, #tpu.dimension_semantics<parallel>], iteration_bounds = array<i64: 2, 1>, scalar_prefetch = 0 : i64, scratch_operands = 0 : i64, tpu.core_type = #tpu.core_type<tc>, window_params = [{transform_indices = @transform_0, window_bounds = array<i64: 1, 18, 18, 128>}, {pipeline_mode = #tpu.pipeline_mode<synchronous>, transform_indices = @transform_1, window_bounds = array<i64: 9, 128, 128>}, {transform_indices = @transform_2, window_bounds = array<i64: 1, 16, 16, 128>}, {transform_indices = @transform_3, window_bounds = array<i64: 1, 1, 2, 128>}]} {
    %c0 = arith.constant 0 : index
    %c0_0 = arith.constant 0 : index
    %c0_1 = arith.constant 0 : index
    %c0_2 = arith.constant 0 : index
    %0 = vector.load %arg2[%c0, %c0_0, %c0_1, %c0_2] : memref<1x18x18x128xf32, #tpu.memory_space<vmem>>, vector<1x18x18x128xf32>
    %1 = vector.shape_cast %0 : vector<1x18x18x128xf32> to vector<18x18x128xf32>
    %cst = arith.constant 0.000000e+00 : f32
    %2 = vector.broadcast %cst : f32 to vector<256x128xf32>
    %3 = vector.extract_strided_slice %1 {offsets = [0, 0, 0], sizes = [16, 16, 128], strides = [1, 1, 1]} : vector<18x18x128xf32> to vector<16x16x128xf32>
    %4 = vector.shape_cast %3 : vector<16x16x128xf32> to vector<256x128xf32>
    %c0_3 = arith.constant 0 : index
    %c0_4 = arith.constant 0 : index
    %c0_5 = arith.constant 0 : index
    %5 = vector.load %arg3[%c0_3, %c0_4, %c0_5] : memref<9x128x128xf32, #tpu.memory_space<vmem>>, vector<1x128x128xf32>
    %6 = vector.shape_cast %5 : vector<1x128x128xf32> to vector<128x128xf32>
    %cst_6 = arith.constant dense<0.000000e+00> : vector<256x128xf32>
    %7 = tpu.matmul %4, %6, %cst_6 {dimension_numbers = #tpu.dot_dimension_numbers<[1], [0], [0], [1], [0, 0, 1, 1], [], []>} : vector<256x128xf32>, vector<128x128xf32>, vector<256x128xf32> -> vector<256x128xf32>
    %8 = arith.addf %2, %7 : vector<256x128xf32>
    %9 = vector.extract_strided_slice %1 {offsets = [0, 1, 0], sizes = [16, 16, 128], strides = [1, 1, 1]} : vector<18x18x128xf32> to vector<16x16x128xf32>
    %10 = vector.shape_cast %9 : vector<16x16x128xf32> to vector<256x128xf32>
    %c1 = arith.constant 1 : index
    %c0_7 = arith.constant 0 : index
    %c0_8 = arith.constant 0 : index
    %11 = vector.load %arg3[%c1, %c0_7, %c0_8] : memref<9x128x128xf32, #tpu.memory_space<vmem>>, vector<1x128x128xf32>
    %12 = vector.shape_cast %11 : vector<1x128x128xf32> to vector<128x128xf32>
    %cst_9 = arith.constant dense<0.000000e+00> : vector<256x128xf32>
    %13 = tpu.matmul %10, %12, %cst_9 {dimension_numbers = #tpu.dot_dimension_numbers<[1], [0], [0], [1], [0, 0, 1, 1], [], []>} : vector<256x128xf32>, vector<128x128xf32>, vector<256x128xf32> -> vector<256x128xf32>
    %14 = arith.addf %8, %13 : vector<256x128xf32>
    %15 = vector.extract_strided_slice %1 {offsets = [0, 2, 0], sizes = [16, 16, 128], strides = [1, 1, 1]} : vector<18x18x128xf32> to vector<16x16x128xf32>
    %16 = vector.shape_cast %15 : vector<16x16x128xf32> to vector<256x128xf32>
    %c2 = arith.constant 2 : index
    %c0_10 = arith.constant 0 : index
    %c0_11 = arith.constant 0 : index
    %17 = vector.load %arg3[%c2, %c0_10, %c0_11] : memref<9x128x128xf32, #tpu.memory_space<vmem>>, vector<1x128x128xf32>
    %18 = vector.shape_cast %17 : vector<1x128x128xf32> to vector<128x128xf32>
    %cst_12 = arith.constant dense<0.000000e+00> : vector<256x128xf32>
    %19 = tpu.matmul %16, %18, %cst_12 {dimension_numbers = #tpu.dot_dimension_numbers<[1], [0], [0], [1], [0, 0, 1, 1], [], []>} : vector<256x128xf32>, vector<128x128xf32>, vector<256x128xf32> -> vector<256x128xf32>
    %20 = arith.addf %14, %19 : vector<256x128xf32>
    %21 = vector.extract_strided_slice %1 {offsets = [1, 0, 0], sizes = [16, 16, 128], strides = [1, 1, 1]} : vector<18x18x128xf32> to vector<16x16x128xf32>
    %22 = vector.shape_cast %21 : vector<16x16x128xf32> to vector<256x128xf32>
    %c3 = arith.constant 3 : index
    %c0_13 = arith.constant 0 : index
    %c0_14 = arith.constant 0 : index
    %23 = vector.load %arg3[%c3, %c0_13, %c0_14] : memref<9x128x128xf32, #tpu.memory_space<vmem>>, vector<1x128x128xf32>
    %24 = vector.shape_cast %23 : vector<1x128x128xf32> to vector<128x128xf32>
    %cst_15 = arith.constant dense<0.000000e+00> : vector<256x128xf32>
    %25 = tpu.matmul %22, %24, %cst_15 {dimension_numbers = #tpu.dot_dimension_numbers<[1], [0], [0], [1], [0, 0, 1, 1], [], []>} : vector<256x128xf32>, vector<128x128xf32>, vector<256x128xf32> -> vector<256x128xf32>
    %26 = arith.addf %20, %25 : vector<256x128xf32>
    %27 = vector.extract_strided_slice %1 {offsets = [1, 1, 0], sizes = [16, 16, 128], strides = [1, 1, 1]} : vector<18x18x128xf32> to vector<16x16x128xf32>
    %28 = vector.shape_cast %27 : vector<16x16x128xf32> to vector<256x128xf32>
    %c4 = arith.constant 4 : index
    %c0_16 = arith.constant 0 : index
    %c0_17 = arith.constant 0 : index
    %29 = vector.load %arg3[%c4, %c0_16, %c0_17] : memref<9x128x128xf32, #tpu.memory_space<vmem>>, vector<1x128x128xf32>
    %30 = vector.shape_cast %29 : vector<1x128x128xf32> to vector<128x128xf32>
    %cst_18 = arith.constant dense<0.000000e+00> : vector<256x128xf32>
    %31 = tpu.matmul %28, %30, %cst_18 {dimension_numbers = #tpu.dot_dimension_numbers<[1], [0], [0], [1], [0, 0, 1, 1], [], []>} : vector<256x128xf32>, vector<128x128xf32>, vector<256x128xf32> -> vector<256x128xf32>
    %32 = arith.addf %26, %31 : vector<256x128xf32>
    %33 = vector.extract_strided_slice %1 {offsets = [1, 2, 0], sizes = [16, 16, 128], strides = [1, 1, 1]} : vector<18x18x128xf32> to vector<16x16x128xf32>
    %34 = vector.shape_cast %33 : vector<16x16x128xf32> to vector<256x128xf32>
    %c5 = arith.constant 5 : index
    %c0_19 = arith.constant 0 : index
    %c0_20 = arith.constant 0 : index
    %35 = vector.load %arg3[%c5, %c0_19, %c0_20] : memref<9x128x128xf32, #tpu.memory_space<vmem>>, vector<1x128x128xf32>
    %36 = vector.shape_cast %35 : vector<1x128x128xf32> to vector<128x128xf32>
    %cst_21 = arith.constant dense<0.000000e+00> : vector<256x128xf32>
    %37 = tpu.matmul %34, %36, %cst_21 {dimension_numbers = #tpu.dot_dimension_numbers<[1], [0], [0], [1], [0, 0, 1, 1], [], []>} : vector<256x128xf32>, vector<128x128xf32>, vector<256x128xf32> -> vector<256x128xf32>
    %38 = arith.addf %32, %37 : vector<256x128xf32>
    %39 = vector.extract_strided_slice %1 {offsets = [2, 0, 0], sizes = [16, 16, 128], strides = [1, 1, 1]} : vector<18x18x128xf32> to vector<16x16x128xf32>
    %40 = vector.shape_cast %39 : vector<16x16x128xf32> to vector<256x128xf32>
    %c6 = arith.constant 6 : index
    %c0_22 = arith.constant 0 : index
    %c0_23 = arith.constant 0 : index
    %41 = vector.load %arg3[%c6, %c0_22, %c0_23] : memref<9x128x128xf32, #tpu.memory_space<vmem>>, vector<1x128x128xf32>
    %42 = vector.shape_cast %41 : vector<1x128x128xf32> to vector<128x128xf32>
    %cst_24 = arith.constant dense<0.000000e+00> : vector<256x128xf32>
    %43 = tpu.matmul %40, %42, %cst_24 {dimension_numbers = #tpu.dot_dimension_numbers<[1], [0], [0], [1], [0, 0, 1, 1], [], []>} : vector<256x128xf32>, vector<128x128xf32>, vector<256x128xf32> -> vector<256x128xf32>
    %44 = arith.addf %38, %43 : vector<256x128xf32>
    %45 = vector.extract_strided_slice %1 {offsets = [2, 1, 0], sizes = [16, 16, 128], strides = [1, 1, 1]} : vector<18x18x128xf32> to vector<16x16x128xf32>
    %46 = vector.shape_cast %45 : vector<16x16x128xf32> to vector<256x128xf32>
    %c7 = arith.constant 7 : index
    %c0_25 = arith.constant 0 : index
    %c0_26 = arith.constant 0 : index
    %47 = vector.load %arg3[%c7, %c0_25, %c0_26] : memref<9x128x128xf32, #tpu.memory_space<vmem>>, vector<1x128x128xf32>
    %48 = vector.shape_cast %47 : vector<1x128x128xf32> to vector<128x128xf32>
    %cst_27 = arith.constant dense<0.000000e+00> : vector<256x128xf32>
    %49 = tpu.matmul %46, %48, %cst_27 {dimension_numbers = #tpu.dot_dimension_numbers<[1], [0], [0], [1], [0, 0, 1, 1], [], []>} : vector<256x128xf32>, vector<128x128xf32>, vector<256x128xf32> -> vector<256x128xf32>
    %50 = arith.addf %44, %49 : vector<256x128xf32>
    %51 = vector.extract_strided_slice %1 {offsets = [2, 2, 0], sizes = [16, 16, 128], strides = [1, 1, 1]} : vector<18x18x128xf32> to vector<16x16x128xf32>
    %52 = vector.shape_cast %51 : vector<16x16x128xf32> to vector<256x128xf32>
    %c8 = arith.constant 8 : index
    %c0_28 = arith.constant 0 : index
    %c0_29 = arith.constant 0 : index
    %53 = vector.load %arg3[%c8, %c0_28, %c0_29] : memref<9x128x128xf32, #tpu.memory_space<vmem>>, vector<1x128x128xf32>
    %54 = vector.shape_cast %53 : vector<1x128x128xf32> to vector<128x128xf32>
    %cst_30 = arith.constant dense<0.000000e+00> : vector<256x128xf32>
    %55 = tpu.matmul %52, %54, %cst_30 {dimension_numbers = #tpu.dot_dimension_numbers<[1], [0], [0], [1], [0, 0, 1, 1], [], []>} : vector<256x128xf32>, vector<128x128xf32>, vector<256x128xf32> -> vector<256x128xf32>
    %56 = arith.addf %50, %55 : vector<256x128xf32>
    %57 = vector.shape_cast %56 : vector<256x128xf32> to vector<1x16x16x128xf32>
    %c0_31 = arith.constant 0 : index
    %c0_32 = arith.constant 0 : index
    %c0_33 = arith.constant 0 : index
    %c0_34 = arith.constant 0 : index
    %58 = vector.load %arg4[%c0_31, %c0_32, %c0_33, %c0_34] : memref<1x16x16x128xf32, #tpu.memory_space<vmem>>, vector<1x16x16x128xf32>
    tpu.vector_store %arg4[%c0_31, %c0_32, %c0_33, %c0_34], %57 {strides = array<i32>} : memref<1x16x16x128xf32, #tpu.memory_space<vmem>>, vector<1x16x16x128xf32>,
    %cst_35 = arith.constant dense<0.000000e+00> : vector<128xf32>
    %59 = vector.multi_reduction <add>, %56, %cst_35 [0] : vector<256x128xf32> to vector<128xf32>
    %60 = vector.shape_cast %59 : vector<128xf32> to vector<1x128xf32>
    %61 = arith.mulf %56, %56 : vector<256x128xf32>
    %cst_36 = arith.constant dense<0.000000e+00> : vector<128xf32>
    %62 = vector.multi_reduction <add>, %61, %cst_36 [0] : vector<256x128xf32> to vector<128xf32>
    %63 = vector.shape_cast %62 : vector<128xf32> to vector<1x128xf32>
    %64 = tpu.concatenate %60, %63 in 0 : vector<1x128xf32>, vector<1x128xf32> -> vector<2x128xf32>
    %65 = vector.shape_cast %64 : vector<2x128xf32> to vector<1x1x2x128xf32>
    %c0_37 = arith.constant 0 : index
    %c0_38 = arith.constant 0 : index
    %c0_39 = arith.constant 0 : index
    %c0_40 = arith.constant 0 : index
    %66 = vector.load %arg5[%c0_37, %c0_38, %c0_39, %c0_40] : memref<1x1x2x128xf32, #tpu.memory_space<vmem>>, vector<1x1x2x128xf32>
    tpu.vector_store %arg5[%c0_37, %c0_38, %c0_39, %c0_40], %65 {strides = array<i32>} : memref<1x1x2x128xf32, #tpu.memory_space<vmem>>, vector<1x1x2x128xf32>,
    return
  }
  func.func @transform_0(%arg0: i32, %arg1: i32) -> (i32, i32, i32, i32) {
    %c1_i32 = arith.constant 1 : i32
    %0 = arith.muli %arg0, %c1_i32 : i32
    %1 = arith.addi %0, %arg1 : i32
    %c0_i32 = arith.constant 0 : i32
    %c0_i32_0 = arith.constant 0 : i32
    %c0_i32_1 = arith.constant 0 : i32
    %c0_i32_2 = arith.constant 0 : i32
    return %1, %c0_i32, %c0_i32_0, %c0_i32_1 : i32, i32, i32, i32
  }
  func.func @transform_1(%arg0: i32, %arg1: i32) -> (i32, i32, i32) {
    %c0_i32 = arith.constant 0 : i32
    %c0_i32_0 = arith.constant 0 : i32
    %c0_i32_1 = arith.constant 0 : i32
    %c0_i32_2 = arith.constant 0 : i32
    return %c0_i32, %c0_i32_0, %c0_i32_1 : i32, i32, i32
  }
  func.func @transform_2(%arg0: i32, %arg1: i32) -> (i32, i32, i32, i32) {
    %c0_i32 = arith.constant 0 : i32
    %c0_i32_0 = arith.constant 0 : i32
    %c0_i32_1 = arith.constant 0 : i32
    return %arg0, %arg1, %c0_i32, %c0_i32_0 : i32, i32, i32, i32
  }
  func.func @transform_3(%arg0: i32, %arg1: i32) -> (i32, i32, i32, i32) {
    %c0_i32 = arith.constant 0 : i32
    %c0_i32_0 = arith.constant 0 : i32
    %c0_i32_1 = arith.constant 0 : i32
    return %arg0, %arg1, %c0_i32, %c0_i32_0 : i32, i32, i32, i32
  }
}

module attributes {stable_mosaic.version = 11 : i64} {
  func.func @_bn_relu_kernel(%arg0: i32, %arg1: i32, %arg2: memref<1x16x16x128xf32, #tpu.memory_space<vmem>>, %arg3: memref<1x128xf32, #tpu.memory_space<vmem>>, %arg4: memref<1x128xf32, #tpu.memory_space<vmem>>, %arg5: memref<1x16x16x128xf32, #tpu.memory_space<vmem>>) attributes {dimension_semantics = [#tpu.dimension_semantics<parallel>, #tpu.dimension_semantics<parallel>], iteration_bounds = array<i64: 2, 1>, scalar_prefetch = 0 : i64, scratch_operands = 0 : i64, tpu.core_type = #tpu.core_type<tc>, window_params = [{transform_indices = @transform_0, window_bounds = array<i64: 1, 16, 16, 128>}, {pipeline_mode = #tpu.pipeline_mode<synchronous>, transform_indices = @transform_1, window_bounds = array<i64: 1, 128>}, {pipeline_mode = #tpu.pipeline_mode<synchronous>, transform_indices = @transform_2, window_bounds = array<i64: 1, 128>}, {transform_indices = @transform_3, window_bounds = array<i64: 1, 16, 16, 128>}]} {
    %c0 = arith.constant 0 : index
    %c0_0 = arith.constant 0 : index
    %0 = vector.load %arg3[%c0, %c0_0] : memref<1x128xf32, #tpu.memory_space<vmem>>, vector<1x128xf32>
    %1 = vector.shape_cast %0 : vector<1x128xf32> to vector<1x1x1x128xf32>
    %c0_1 = arith.constant 0 : index
    %c0_2 = arith.constant 0 : index
    %2 = vector.load %arg4[%c0_1, %c0_2] : memref<1x128xf32, #tpu.memory_space<vmem>>, vector<1x128xf32>
    %3 = vector.shape_cast %2 : vector<1x128xf32> to vector<1x1x1x128xf32>
    %c0_3 = arith.constant 0 : index
    %c0_4 = arith.constant 0 : index
    %c0_5 = arith.constant 0 : index
    %c0_6 = arith.constant 0 : index
    %4 = vector.load %arg2[%c0_3, %c0_4, %c0_5, %c0_6] : memref<1x16x16x128xf32, #tpu.memory_space<vmem>>, vector<1x16x16x128xf32>
    %5 = vector.broadcast %1 : vector<1x1x1x128xf32> to vector<1x16x16x128xf32>
    %6 = arith.mulf %4, %5 : vector<1x16x16x128xf32>
    %7 = vector.broadcast %3 : vector<1x1x1x128xf32> to vector<1x16x16x128xf32>
    %8 = arith.addf %6, %7 : vector<1x16x16x128xf32>
    %cst = arith.constant 0.000000e+00 : f32
    %9 = vector.broadcast %cst : f32 to vector<1x16x16x128xf32>
    %10 = arith.maximumf %8, %9 : vector<1x16x16x128xf32>
    %c0_7 = arith.constant 0 : index
    %c0_8 = arith.constant 0 : index
    %c0_9 = arith.constant 0 : index
    %c0_10 = arith.constant 0 : index
    %11 = vector.load %arg5[%c0_7, %c0_8, %c0_9, %c0_10] : memref<1x16x16x128xf32, #tpu.memory_space<vmem>>, vector<1x16x16x128xf32>
    tpu.vector_store %arg5[%c0_7, %c0_8, %c0_9, %c0_10], %10 {strides = array<i32>} : memref<1x16x16x128xf32, #tpu.memory_space<vmem>>, vector<1x16x16x128xf32>,
    return
  }
  func.func @transform_0(%arg0: i32, %arg1: i32) -> (i32, i32, i32, i32) {
    %c0_i32 = arith.constant 0 : i32
    %c0_i32_0 = arith.constant 0 : i32
    %c0_i32_1 = arith.constant 0 : i32
    return %arg0, %arg1, %c0_i32, %c0_i32_0 : i32, i32, i32, i32
  }
  func.func @transform_1(%arg0: i32, %arg1: i32) -> (i32, i32) {
    %c0_i32 = arith.constant 0 : i32
    %c0_i32_0 = arith.constant 0 : i32
    %c0_i32_1 = arith.constant 0 : i32
    return %c0_i32, %c0_i32_0 : i32, i32
  }
  func.func @transform_2(%arg0: i32, %arg1: i32) -> (i32, i32) {
    %c0_i32 = arith.constant 0 : i32
    %c0_i32_0 = arith.constant 0 : i32
    %c0_i32_1 = arith.constant 0 : i32
    return %c0_i32, %c0_i32_0 : i32, i32
  }
  func.func @transform_3(%arg0: i32, %arg1: i32) -> (i32, i32, i32, i32) {
    %c0_i32 = arith.constant 0 : i32
    %c0_i32_0 = arith.constant 0 : i32
    %c0_i32_1 = arith.constant 0 : i32
    return %arg0, %arg1, %c0_i32, %c0_i32_0 : i32, i32, i32, i32
  }
}

</mosaic_0001>

<bundles_post_ra>
// kernel: double_conv.5
= control target key start
LH: loop header
LB: loop body
LE: loop exit
PB: predicated region body
PF: predicated region fallthrough
CT: control target
= control target key end

     0   :  { %s568_s12 = smov 0   ;;  %s570_s13 = smov 0   ;;  %s743_s0 = inlined_call_operand.vmem [shape: f32[2,16,16,128], index: 0, kind: input, shape index: {}]   ;;  %s744_s1 = inlined_call_operand.vmem [shape: f32[1,128], index: 1, kind: input, shape index: {}]   ;;  %s745_s2 = inlined_call_operand.vmem [shape: f32[1,128], index: 2, kind: input, shape index: {}]   ;;  %s746_s3 = inlined_call_operand.vmem [shape: f32[2,16,16,128], index: 3, kind: output, shape index: {}]  }
   0x1   :  { %s572_s14 = smov 0  }
   0x2 LB: > { %s25_s15 = sadd.s32 1, %s542_s13  ;;  %p489_p0 = scmp.ge.s32.totalorder %s546_s14, 1  ;;  %s546_s14 = sphi %s572_s14, %s13_s14   ;;  %s542_s13 = sphi %s570_s13, %s748_s13   ;;  %s538_s12 = sphi %s568_s12, %s747_s12  }
   0x3   : > { %p27_p1 = scmp.ge.s32.totalorder %s25_s15, 2  ;;  %p159_p2 = scmp.lt.s32.totalorder %s546_s14, 3 }
   0x5   : > { %s750_s15 = smov (%p27_p1, %s25_s15), 0  ;;  %p160_p3 = pnand %p489_p0, %p159_p2 }
   0x6   : > { %p194_p4 = scmp.lt.s32.totalorder (!%p160_p3), %s538_s12, 1  ;;  %v589_v0 = vld [vmem:[%s744_s1] ss:$0 sm:$0xff] (!%p160_p3) }
   0x7   : > { %163 = sbr.rel (%p160_p3) target bundleno = 47 (0x2f), region = 32  ;;  %v599_v1 = vld [vmem:[%s745_s2] ss:$0 sm:$0xff] (!%p160_p3) }
   0xe   : > { %s752_s12 = smov (!%p194_p4, %s538_s12), 1 }
   0xf   : > { %s498_s16 = sshll.u32 %s752_s12, 8 }
  0x10   : > { %s594_s21 = scalar_lea.vmem %s743_s0, %s498_s16  ;;  %s622_s26 = scalar_lea.vmem %s746_s3, %s498_s16 }
  0x11   : > { %v217_v2 = vld [vmem:[%s594_s21] sm:$0xff]  ;;  %v218_v3 = vld [vmem:[%s594_s21 + $0x8] sm:$0xff]  ;;  %v219_v4 = vld [vmem:[%s594_s21 + $0x10] sm:$0xff] }
  0x12   : > { %v255_v5 = vmul.f32 %v589_v0, %v217_v2  ;;  %v256_v6 = vmul.f32 %v589_v0, %v218_v3  ;;  %v257_v7 = vmul.f32 %v589_v0, %v219_v4  ;;  %v220_v8 = vld [vmem:[%s594_s21 + $0x18] sm:$0xff]  ;;  %v221_v9 = vld [vmem:[%s594_s21 + $0x20] sm:$0xff]  ;;  %v222_v10 = vld [vmem:[%s594_s21 + $0x28] sm:$0xff] }
  0x13   : > { %v258_v11 = vmul.f32 %v589_v0, %v220_v8  ;;  %v259_v12 = vmul.f32 %v589_v0, %v221_v9  ;;  %v260_v13 = vmul.f32 %v589_v0, %v222_v10  ;;  %v223_v14 = vld [vmem:[%s594_s21 + $0x30] sm:$0xff]  ;;  %v224_v15 = vld [vmem:[%s594_s21 + $0x38] sm:$0xff]  ;;  %v225_v24 = vld [vmem:[%s594_s21 + $0x40] sm:$0xff] }
  0x14   : > { %v293_v16 = vadd.f32 %v599_v1, %v255_v5  ;;  %v294_v17 = vadd.f32 %v599_v1, %v256_v6  ;;  %v295_v18 = vadd.f32 %v599_v1, %v257_v7  ;;  %v261_v19 = vmul.f32 %v589_v0, %v223_v14  ;;  %v226_v25 = vld [vmem:[%s594_s21 + $0x48] sm:$0xff]  ;;  %v227_v26 = vld [vmem:[%s594_s21 + $0x50] sm:$0xff]  ;;  %v228_v31 = vld [vmem:[%s594_s21 + $0x58] sm:$0xff] }
  0x15   : > { %v296_v20 = vadd.f32 %v599_v1, %v258_v11  ;;  %v297_v21 = vadd.f32 %v599_v1, %v259_v12  ;;  %v298_v22 = vadd.f32 %v599_v1, %v260_v13  ;;  %v262_v23 = vmul.f32 %v589_v0, %v224_v15  ;;  %v229_v32 = vld [vmem:[%s594_s21 + $0x60] sm:$0xff]  ;;  %v230_v33 = vld [vmem:[%s594_s21 + $0x68] sm:$0xff]  ;;  %v231_v38 = vld [vmem:[%s594_s21 + $0x70] sm:$0xff] }
  0x16   : > { %v325_v27 = vmax.f32 %v293_v16, 0.0  ;;  %v326_v28 = vmax.f32 %v294_v17, 0.0  ;;  %v327_v29 = vmax.f32 %v295_v18, 0.0  ;;  %v299_v30 = vadd.f32 %v599_v1, %v261_v19  ;;  %v232_v43 = vld [vmem:[%s594_s21 + $0x78] sm:$0xff]  ;;  %v233_v56 = vld [vmem:[%s594_s21 + $0x80] sm:$0xff]  ;;  %v234_v57 = vld [vmem:[%s594_s21 + $0x88] sm:$0xff] }
  0x17   : > { %v328_v34 = vmax.f32 %v296_v20, 0.0  ;;  %v329_v35 = vmax.f32 %v297_v21, 0.0  ;;  %v330_v36 = vmax.f32 %v298_v22, 0.0  ;;  %v300_v37 = vadd.f32 %v599_v1, %v262_v23  ;;  %v235_v58 = vld [vmem:[%s594_s21 + $0x90] sm:$0xff]  ;;  %v236_v63 = vld [vmem:[%s594_s21 + $0x98] sm:$0xff]  ;;  %v237_v2 = vld [vmem:[%s594_s21 + $0xa0] sm:$0xff] }
  0x18   : > { %357 = vst [vmem:[%s622_s26] sm:$0xff] %v325_v27  ;;  %358 = vst [vmem:[%s622_s26 + $0x8] sm:$0xff] %v326_v28  ;;  %v331_v39 = vmax.f32 %v299_v30, 0.0  ;;  %v263_v40 = vmul.f32 %v589_v0, %v225_v24  ;;  %v264_v41 = vmul.f32 %v589_v0, %v226_v25  ;;  %v265_v42 = vmul.f32 %v589_v0, %v227_v26  ;;  %v238_v3 = vld [vmem:[%s594_s21 + $0xa8] sm:$0xff]  ;;  %v239_v8 = vld [vmem:[%s594_s21 + $0xb0] sm:$0xff] }
  0x19   : > { %359 = vst [vmem:[%s622_s26 + $0x10] sm:$0xff] %v327_v29  ;;  %360 = vst [vmem:[%s622_s26 + $0x18] sm:$0xff] %v328_v34  ;;  %v332_v44 = vmax.f32 %v300_v37, 0.0  ;;  %v266_v45 = vmul.f32 %v589_v0, %v228_v31  ;;  %v267_v46 = vmul.f32 %v589_v0, %v229_v32  ;;  %v268_v47 = vmul.f32 %v589_v0, %v230_v33  ;;  %v240_v13 = vld [vmem:[%s594_s21 + $0xb8] sm:$0xff]  ;;  %v241_v26 = vld [vmem:[%s594_s21 + $0xc0] sm:$0xff] }
  0x1a   : > { %361 = vst [vmem:[%s622_s26 + $0x20] sm:$0xff] %v329_v35  ;;  %362 = vst [vmem:[%s622_s26 + $0x28] sm:$0xff] %v330_v36  ;;  %v301_v48 = vadd.f32 %v599_v1, %v263_v40  ;;  %v302_v49 = vadd.f32 %v599_v1, %v264_v41  ;;  %v303_v50 = vadd.f32 %v599_v1, %v265_v42  ;;  %v242_v27 = vld [vmem:[%s594_s21 + $0xc8] sm:$0xff]  ;;  %v243_v28 = vld [vmem:[%s594_s21 + $0xd0] sm:$0xff] }
  0x1b   : > { %363 = vst [vmem:[%s622_s26 + $0x30] sm:$0xff] %v331_v39  ;;  %v269_v51 = vmul.f32 %v589_v0, %v231_v38  ;;  %364 = vst [vmem:[%s622_s26 + $0x38] sm:$0xff] %v332_v44  ;;  %v304_v52 = vadd.f32 %v599_v1, %v266_v45  ;;  %v305_v53 = vadd.f32 %v599_v1, %v267_v46  ;;  %v244_v33 = vld [vmem:[%s594_s21 + $0xd8] sm:$0xff]  ;;  %v245_v34 = vld [vmem:[%s594_s21 + $0xe0] sm:$0xff] }
  0x1c   : > { %v306_v54 = vadd.f32 %v599_v1, %v268_v47  ;;  %v270_v55 = vmul.f32 %v589_v0, %v232_v43  ;;  %v333_v59 = vmax.f32 %v301_v48, 0.0  ;;  %v334_v60 = vmax.f32 %v302_v49, 0.0  ;;  %v246_v35 = vld [vmem:[%s594_s21 + $0xe8] sm:$0xff]  ;;  %v247_v40 = vld [vmem:[%s594_s21 + $0xf0] sm:$0xff]  ;;  %v248_v45 = vld [vmem:[%s594_s21 + $0xf8] sm:$0xff] }
  0x1d   : > { %v335_v61 = vmax.f32 %v303_v50, 0.0  ;;  %v307_v62 = vadd.f32 %v599_v1, %v269_v51  ;;  %v336_v4 = vmax.f32 %v304_v52, 0.0  ;;  %v337_v5 = vmax.f32 %v305_v53, 0.0 }
  0x1e   : > { %v338_v6 = vmax.f32 %v306_v54, 0.0  ;;  %v308_v7 = vadd.f32 %v599_v1, %v270_v55  ;;  %365 = vst [vmem:[%s622_s26 + $0x40] sm:$0xff] %v333_v59  ;;  %366 = vst [vmem:[%s622_s26 + $0x48] sm:$0xff] %v334_v60  ;;  %v271_v10 = vmul.f32 %v589_v0, %v233_v56  ;;  %v272_v11 = vmul.f32 %v589_v0, %v234_v57 }
  0x1f   : > { %367 = vst [vmem:[%s622_s26 + $0x50] sm:$0xff] %v335_v61  ;;  %v339_v9 = vmax.f32 %v307_v62, 0.0  ;;  %v273_v12 = vmul.f32 %v589_v0, %v235_v58  ;;  %368 = vst [vmem:[%s622_s26 + $0x58] sm:$0xff] %v336_v4  ;;  %v274_v15 = vmul.f32 %v589_v0, %v236_v63  ;;  %v275_v16 = vmul.f32 %v589_v0, %v237_v2 }
  0x20   : > { %369 = vst [vmem:[%s622_s26 + $0x60] sm:$0xff] %v337_v5  ;;  %370 = vst [vmem:[%s622_s26 + $0x68] sm:$0xff] %v338_v6  ;;  %v340_v14 = vmax.f32 %v308_v7, 0.0  ;;  %v276_v17 = vmul.f32 %v589_v0, %v238_v3  ;;  %v309_v18 = vadd.f32 %v599_v1, %v271_v10  ;;  %v310_v19 = vadd.f32 %v599_v1, %v272_v11 }
  0x21   : > { %371 = vst [vmem:[%s622_s26 + $0x70] sm:$0xff] %v339_v9  ;;  %v311_v20 = vadd.f32 %v599_v1, %v273_v12  ;;  %v277_v21 = vmul.f32 %v589_v0, %v239_v8  ;;  %v312_v22 = vadd.f32 %v599_v1, %v274_v15  ;;  %v313_v23 = vadd.f32 %v599_v1, %v275_v16 }
  0x22   : > { %372 = vst [vmem:[%s622_s26 + $0x78] sm:$0xff] %v340_v14  ;;  %v314_v24 = vadd.f32 %v599_v1, %v276_v17  ;;  %v278_v25 = vmul.f32 %v589_v0, %v240_v13  ;;  %v341_v29 = vmax.f32 %v309_v18, 0.0  ;;  %v342_v30 = vmax.f32 %v310_v19, 0.0 }
  0x23   : > { %v343_v31 = vmax.f32 %v311_v20, 0.0  ;;  %v315_v32 = vadd.f32 %v599_v1, %v277_v21  ;;  %v344_v36 = vmax.f32 %v312_v22, 0.0  ;;  %v345_v37 = vmax.f32 %v313_v23, 0.0 }
  0x24   : > { %v346_v38 = vmax.f32 %v314_v24, 0.0  ;;  %v316_v39 = vadd.f32 %v599_v1, %v278_v25  ;;  %373 = vst [vmem:[%s622_s26 + $0x80] sm:$0xff] %v341_v29  ;;  %374 = vst [vmem:[%s622_s26 + $0x88] sm:$0xff] %v342_v30  ;;  %v279_v42 = vmul.f32 %v589_v0, %v241_v26  ;;  %v280_v43 = vmul.f32 %v589_v0, %v242_v27 }
  0x25   : > { %375 = vst [vmem:[%s622_s26 + $0x90] sm:$0xff] %v343_v31  ;;  %v347_v41 = vmax.f32 %v315_v32, 0.0  ;;  %v281_v44 = vmul.f32 %v589_v0, %v243_v28  ;;  %376 = vst [vmem:[%s622_s26 + $0x98] sm:$0xff] %v344_v36  ;;  %v282_v47 = vmul.f32 %v589_v0, %v244_v33  ;;  %v283_v48 = vmul.f32 %v589_v0, %v245_v34 }
  0x26   : > { %377 = vst [vmem:[%s622_s26 + $0xa0] sm:$0xff] %v345_v37  ;;  %378 = vst [vmem:[%s622_s26 + $0xa8] sm:$0xff] %v346_v38  ;;  %v348_v46 = vmax.f32 %v316_v39, 0.0  ;;  %v284_v49 = vmul.f32 %v589_v0, %v246_v35  ;;  %v317_v50 = vadd.f32 %v599_v1, %v279_v42  ;;  %v318_v51 = vadd.f32 %v599_v1, %v280_v43 }
  0x27   : > { %379 = vst [vmem:[%s622_s26 + $0xb0] sm:$0xff] %v347_v41  ;;  %v319_v52 = vadd.f32 %v599_v1, %v281_v44  ;;  %v285_v53 = vmul.f32 %v589_v0, %v247_v40  ;;  %v320_v54 = vadd.f32 %v599_v1, %v282_v47  ;;  %v321_v55 = vadd.f32 %v599_v1, %v283_v48 }
  0x28   : > { %380 = vst [vmem:[%s622_s26 + $0xb8] sm:$0xff] %v348_v46  ;;  %v322_v56 = vadd.f32 %v599_v1, %v284_v49  ;;  %v286_v57 = vmul.f32 %v589_v0, %v248_v45  ;;  %v349_v58 = vmax.f32 %v317_v50, 0.0  ;;  %v350_v59 = vmax.f32 %v318_v51, 0.0 }
  0x29   : > { %v351_v60 = vmax.f32 %v319_v52, 0.0  ;;  %v323_v61 = vadd.f32 %v599_v1, %v285_v53  ;;  %v352_v62 = vmax.f32 %v320_v54, 0.0  ;;  %v353_v63 = vmax.f32 %v321_v55, 0.0 }
  0x2a   : > { %v354_v2 = vmax.f32 %v322_v56, 0.0  ;;  %v324_v3 = vadd.f32 %v599_v1, %v286_v57  ;;  %381 = vst [vmem:[%s622_s26 + $0xc0] sm:$0xff] %v349_v58  ;;  %382 = vst [vmem:[%s622_s26 + $0xc8] sm:$0xff] %v350_v59 }
  0x2b   : > { %383 = vst [vmem:[%s622_s26 + $0xd0] sm:$0xff] %v351_v60  ;;  %v355_v4 = vmax.f32 %v323_v61, 0.0  ;;  %384 = vst [vmem:[%s622_s26 + $0xd8] sm:$0xff] %v352_v62 }
  0x2c   : > { %385 = vst [vmem:[%s622_s26 + $0xe0] sm:$0xff] %v353_v63  ;;  %386 = vst [vmem:[%s622_s26 + $0xe8] sm:$0xff] %v354_v2  ;;  %v356_v0 = vmax.f32 %v324_v3, 0.0 }
  0x2d   : > { %387 = vst [vmem:[%s622_s26 + $0xf0] sm:$0xff] %v355_v4 }
  0x2e   : > { %388 = vst [vmem:[%s622_s26 + $0xf8] sm:$0xff] %v356_v0 }
  0x2f PF: > { %s13_s14 = sadd.s32 1, %s546_s14   ;;  %s747_s12 = smov %s542_s13 }
  0x30   : > { %p10_p5 = scmp.ge.s32.totalorder %s13_s14, 4   ;;  %s748_s13 = smov %s750_s15 }
  0x32   :  { %12 = sbr.rel (!%p10_p5) target bundleno = 2 (0x2), region = 62 }

// kernel: double_conv.4
= control target key start
LH: loop header
LB: loop body
LE: loop exit
PB: predicated region body
PF: predicated region fallthrough
CT: control target
= control target key end

     0   :  { %s5202_s12 = smov 0   ;;  %s5204_s13 = smov 0   ;;  %s6544_s0 = inlined_call_operand.vmem [shape: f32[2,18,18,128], index: 0, kind: input, shape index: {}]   ;;  %s6545_s1 = inlined_call_operand.vmem [shape: f32[9,128,128], index: 1, kind: input, shape index: {}]   ;;  %s6546_s2 = inlined_call_operand.vmem [shape: f32[2,16,16,128], index: 2, kind: output, shape index: {0}]   ;;  %s6547_s3 = inlined_call_operand.vmem [shape: f32[2,1,2,128], index: 3, kind: output, shape index: {1}]  }
   0x1   :  { %s5206_s14 = smov 0  }
   0x2 LB: > { %s26_s15 = sadd.s32 1, %s5176_s13  ;;  %p3258_p0 = scmp.ge.s32.totalorder %s5180_s14, 1  ;;  %s5180_s14 = sphi %s5206_s14, %s14_s14   ;;  %s5176_s13 = sphi %s5204_s13, %s6730_s13   ;;  %s5172_s12 = sphi %s5202_s12, %s6729_s12  }
   0x3   : > { %p28_p1 = scmp.ge.s32.totalorder %s26_s15, 2  ;;  %p160_p2 = scmp.lt.s32.totalorder %s5180_s14, 3 }
   0x5   : > { %s6732_s15 = smov (%p28_p1, %s26_s15), 0  ;;  %p161_p3 = pnand %p3258_p0, %p160_p2 }
   0x7   : > { %164 = sbr.rel (%p161_p3) target bundleno = 569 (0x239), region = 28 }
   0xe   : > { %v3263_v0 = vld [vmem:[%s6545_s1 + $0x80] sm:$0xff]  ;;  %v3264_v1 = vld [vmem:[%s6545_s1 + $0x88] sm:$0xff]  ;;  %p198_p4 = scmp.lt.s32.totalorder %s5172_s12, 1  ;;  %v3265_v5 = vld [vmem:[%s6545_s1 + $0x90] sm:$0xff]  ;;  %vm340_vm0 = vcmask 1046528   ;;  %vm920_vm1 = vcmask 1045504  }
   0xf   : > { %v3311_v2 = vld [vmem:[%s6545_s1 + $0x200] sm:$0xff]  ;;  %v4546_v3 = vpack.c.bf16 %v3264_v1, %v3263_v0  ;;  %v3312_v4 = vld [vmem:[%s6545_s1 + $0x208] sm:$0xff]  ;;  %v3266_v6 = vld [vmem:[%s6545_s1 + $0x98] sm:$0xff]  ;;  %vm3123_vm2 = vcmask 1040384  }
  0x10   : > { %v5238_v7 = vpack.c.bf16 %v3312_v4, %v3311_v2  ;;  %v4550_v8 = vpack.c.bf16 %v3266_v6, %v3265_v5  ;;  %v3313_v9 = vld [vmem:[%s6545_s1 + $0x210] sm:$0xff]  ;;  %v3314_v10 = vld [vmem:[%s6545_s1 + $0x218] sm:$0xff]  ;;  %v3267_v11 = vld [vmem:[%s6545_s1 + $0xa0] sm:$0xff]  ;;  %s6734_s12 = smov (!%p198_p4, %s5172_s12), 1 }
  0x11   : > { %4547 = vmatprep.subr.bf16.mxu1 %v4546_v3  ;;  %v5251_v12 = vpack.c.bf16 %v3314_v10, %v3313_v9  ;;  %v3268_v13 = vld [vmem:[%s6545_s1 + $0xa8] sm:$0xff]  ;;  %v3315_v14 = vld [vmem:[%s6545_s1 + $0x220] sm:$0xff]  ;;  %s5106_s17 = smul.u32 432, %s6734_s12  ;;  %v3269_v18 = vld [vmem:[%s6545_s1 + $0xb0] sm:$0xff]  ;;  %s3262_s23 = sshll.u32 %s6734_s12, 1 }
  0x12   : > { %6630 = vst [vmem:[#allocation2_spill] sm:$0xff] %v5238_v7  ;;  %v3316_v15 = vld [vmem:[%s6545_s1 + $0x228] sm:$0xff]  ;;  %4675 = vmatprep.subr.bf16.mxu0 %v5238_v7  ;;  %4549 = vmatpush3.bf16.msra.mxu1 %v4546_v3  ;;  %v4554_v16 = vpack.c.bf16 %v3268_v13, %v3267_v11  ;;  %v3270_v19 = vld [vmem:[%s6545_s1 + $0xb8] sm:$0xff]  ;;  %v3317_v20 = vld [vmem:[%s6545_s1 + $0x230] sm:$0xff]  ;;  %s221_s26 = scalar_lea.vmem %s6547_s3, %s3262_s23 }
  0x13   : > { %6631 = vst [vmem:[#allocation3_spill] sm:$0xff] %v5251_v12  ;;  %4677 = vmatpush3.bf16.msra.mxu0 %v5238_v7  ;;  %4551 = vmatprep.subr.bf16.mxu1 %v4550_v8  ;;  %v5266_v17 = vpack.c.bf16 %v3316_v15, %v3315_v14  ;;  %v3318_v21 = vld [vmem:[%s6545_s1 + $0x238] sm:$0xff]  ;;  %s5283_s28 = scalar_lea.vmem %s6544_s0, %s5106_s17  ;;  %v4558_v22 = vpack.c.bf16 %v3270_v19, %v3269_v18  ;;  %v3271_v23 = vld [vmem:[%s6545_s1 + $0xc0] sm:$0xff]  ;;  %v3272_v24 = vld [vmem:[%s6545_s1 + $0xc8] sm:$0xff] }
  0x14   : > { %4679 = vmatprep.subr.bf16.mxu0 %v5251_v12  ;;  %v5293_v25 = vpack.c.bf16 %v3318_v21, %v3317_v20  ;;  %v3319_v26 = vld [vmem:[%s6545_s1 + $0x240] sm:$0xff]  ;;  %v3320_v27 = vld [vmem:[%s6545_s1 + $0x248] sm:$0xff]  ;;  %v5309_v31 = vld [vmem:[%s5283_s28 + $0x18] sm:$0xff]  ;;  %v4562_v36 = vpack.c.bf16 %v3272_v24, %v3271_v23 }
  0x15   : > { %6632 = vst [vmem:[#allocation4_spill] sm:$0xff] %v5266_v17  ;;  %v5302_v28 = vld [vmem:[%s5283_s28] sm:$0xff]  ;;  %v5305_v29 = vld [vmem:[%s5283_s28 + $0x8] sm:$0xff]  ;;  %v346_v34 = vrot.slane %v5309_v31, 1  ;;  %v5319_v37 = vpack.c.bf16 %v3320_v27, %v3319_v26  ;;  %v3273_v38 = vld [vmem:[%s6545_s1 + $0xd0] sm:$0xff] }
  0x16   : > { %4553 = vmatpush3.bf16.msra.mxu1 %v4550_v8  ;;  %6633 = vst [vmem:[#allocation5_spill] sm:$0xff] %v5293_v25  ;;  %v341_v30 = vrot.slane %v5302_v28, 1  ;;  %v5312_v32 = vld [vmem:[%s5283_s28 + $0x20] sm:$0xff]  ;;  %v342_v33 = vrot.slane %v5305_v29, 1  ;;  %v3274_v39 = vld [vmem:[%s6545_s1 + $0xd8] sm:$0xff]  ;;  %v3321_v42 = vld [vmem:[%s6545_s1 + $0x250] sm:$0xff] }
  0x17   : > { %4681 = vmatpush3.bf16.msra.mxu0 %v5251_v12  ;;  %4555 = vmatprep.subr.bf16.mxu1 %v4554_v16  ;;  %v347_v35 = vrot.slane %v5312_v32, 1  ;;  %6634 = vst [vmem:[#allocation6_spill] sm:$0xff] %v5319_v37  ;;  %v3322_v43 = vld [vmem:[%s6545_s1 + $0x258] sm:$0xff]  ;;  %v4566_v44 = vpack.c.bf16 %v3274_v39, %v3273_v38  ;;  %v3275_v46 = vld [vmem:[%s6545_s1 + $0xe0] sm:$0xff]  ;;  %v3276_v47 = vld [vmem:[%s6545_s1 + $0xe8] sm:$0xff] }
  0x18   : > { %4683 = vmatprep.subr.bf16.mxu0 %v5266_v17  ;;  %v343_v40 = vsel %vm340_vm0, %v341_v30, %v342_v33  ;;  %v5344_v45 = vpack.c.bf16 %v3322_v43, %v3321_v42  ;;  %v3323_v48 = vld [vmem:[%s6545_s1 + $0x260] sm:$0xff]  ;;  %v3324_v49 = vld [vmem:[%s6545_s1 + $0x268] sm:$0xff]  ;;  %v4570_v50 = vpack.c.bf16 %v3276_v47, %v3275_v46  ;;  %v3277_v52 = vld [vmem:[%s6545_s1 + $0xf0] sm:$0xff] }
  0x19   : > { %v5333_v41 = vsel %vm340_vm0, %v346_v34, %v347_v35  ;;  %3858 = vmatprep.mubr.f32.mxu1 %v343_v40  ;;  %v5360_v51 = vpack.c.bf16 %v3324_v49, %v3323_v48  ;;  %v3278_v53 = vld [vmem:[%s6545_s1 + $0xf8] sm:$0xff]  ;;  %v3325_v54 = vld [vmem:[%s6545_s1 + $0x270] sm:$0xff]  ;;  %v276_v59 = vld [vmem:[%s6545_s1] sm:$0xff] }
  0x1a   : > { %4557 = vmatpush3.bf16.msra.mxu1 %v4554_v16  ;;  %4178 = vmatprep.mubr.f32.mxu0 %v5333_v41  ;;  %6635 = vst [vmem:[#allocation7_spill] sm:$0xff] %v5344_v45  ;;  %v3326_v55 = vld [vmem:[%s6545_s1 + $0x278] sm:$0xff]  ;;  %v4574_v56 = vpack.c.bf16 %v3278_v53, %v3277_v52  ;;  %v224_v57 = vld [vmem:[%s5283_s28 + $0x10] sm:$0x3]  ;;  %v277_v60 = vld [vmem:[%s6545_s1 + $0x8] sm:$0xff] }
  0x1b   : > { %4685 = vmatpush3.bf16.msra.mxu0 %v5266_v17  ;;  %4559 = vmatprep.subr.bf16.mxu1 %v4558_v22  ;;  %6636 = vst [vmem:[#allocation8_spill] sm:$0xff] %v5360_v51  ;;  %v5377_v58 = vpack.c.bf16 %v3326_v55, %v3325_v54  ;;  %v5386_v61 = vld [vmem:[%s5283_s28 + $0x28] sm:$0x3]  ;;  %v3327_v62 = vld [vmem:[%s6545_s1 + $0x280] sm:$0xff]  ;;  %v344_v0 = vrot.slane %v224_v57, 1  ;;  %v5395_v1 = vld [vmem:[%s5283_s28 + $0x30] sm:$0xff]  ;;  %v4578_v3 = vpack.c.bf16 %v277_v60, %v276_v59 }
  0x1c   : > { %4687 = vmatprep.subr.bf16.mxu0 %v5293_v25  ;;  %v3328_v63 = vld [vmem:[%s6545_s1 + $0x288] sm:$0xff]  ;;  %v5398_v2 = vld [vmem:[%s5283_s28 + $0x38] sm:$0xff]  ;;  %v349_v4 = vrot.slane %v5386_v61, 1  ;;  %v5404_v6 = vld [vmem:[%s5283_s28 + $0x40] sm:$0x3]  ;;  %v351_v9 = vrot.slane %v5395_v1, 1 }
  0x1d   : > { %6637 = vst [vmem:[#allocation9_spill] sm:$0xff] %v5377_v58  ;;  %v4706_v5 = vpack.c.bf16 %v3328_v63, %v3327_v62  ;;  %v3329_v8 = vld [vmem:[%s6545_s1 + $0x290] sm:$0xff]  ;;  %v352_v10 = vrot.slane %v5398_v2, 1  ;;  %v3330_v11 = vld [vmem:[%s6545_s1 + $0x298] sm:$0xff]  ;;  %v5415_v13 = vld [vmem:[%s5283_s28 + $0x48] sm:$0xff]  ;;  %v345_v15 = vsel %vm340_vm0, %v342_v33, %v344_v0  ;;  %v354_v20 = vrot.slane %v5404_v6, 1 }
  0x1e   : > { %4561 = vmatpush3.bf16.msra.mxu1 %v4558_v22  ;;  %v5418_v14 = vld [vmem:[%s5283_s28 + $0x50] sm:$0xff]  ;;  %v279_v18 = vld [vmem:[%s6545_s1 + $0x18] sm:$0xff]  ;;  %v350_v19 = vsel %vm340_vm0, %v347_v35, %v349_v4  ;;  %v4710_v21 = vpack.c.bf16 %v3330_v11, %v3329_v8  ;;  %v356_v22 = vrot.slane %v5415_v13, 1  ;;  %v3331_v26 = vld [vmem:[%s6545_s1 + $0x2a0] sm:$0xff] }
  0x1f   : > { %4689 = vmatpush3.bf16.msra.mxu0 %v5293_v25  ;;  %4563 = vmatprep.subr.bf16.mxu1 %v4562_v36  ;;  %v278_v16 = vld [vmem:[%s6545_s1 + $0x10] sm:$0xff]  ;;  %v357_v23 = vrot.slane %v5418_v14, 1  ;;  %v5437_v24 = vld [vmem:[%s5283_s28 + $0x58] sm:$0x3]  ;;  %v5443_v27 = vsel %vm340_vm0, %v351_v9, %v352_v10  ;;  %v3332_v33 = vld [vmem:[%s6545_s1 + $0x2a8] sm:$0xff]  ;;  %v5462_v39 = vsel %vm340_vm0, %v352_v10, %v354_v20  ;;  %v931_v25 = vrot.slane %v5395_v1, 2 }
  0x20   : > { %4691 = vmatprep.subr.bf16.mxu0 %v5319_v37  ;;  %6638 = vst [vmem:[#allocation10_spill] sm:$0xff] %v5443_v27  ;;  %v4582_v30 = vpack.c.bf16 %v279_v18, %v278_v16  ;;  %v5449_v34 = vld [vmem:[%s5283_s28 + $0x60] sm:$0xff]  ;;  %v5452_v35 = vld [vmem:[%s5283_s28 + $0x68] sm:$0xff]  ;;  %6639 = vst [vmem:[#allocation11_spill] sm:$0xff] %v5462_v39  ;;  %v359_v40 = vrot.slane %v5437_v24, 1  ;;  %v4714_v43 = vpack.c.bf16 %v3332_v33, %v3331_v26 }
  0x21   : > { %v281_v38 = vld [vmem:[%s6545_s1 + $0x28] sm:$0xff]  ;;  %v5467_v42 = vsel %vm340_vm0, %v356_v22, %v357_v23  ;;  %v362_v46 = vrot.slane %v5452_v35, 1  ;;  %v5472_v47 = vld [vmem:[%s5283_s28 + $0x70] sm:$0x3]  ;;  %v3334_v48 = vld [vmem:[%s6545_s1 + $0x2b8] sm:$0xff] }
  0x22   : > { %4565 = vmatpush3.bf16.msra.mxu1 %v4562_v36  ;;  %v280_v36 = vld [vmem:[%s6545_s1 + $0x20] sm:$0xff]  ;;  %6640 = vst [vmem:[#allocation12_spill] sm:$0xff] %v5467_v42  ;;  %v5481_v49 = vld [vmem:[%s5283_s28 + $0x78] sm:$0xff]  ;;  %v282_v53 = vld [vmem:[%s6545_s1 + $0x30] sm:$0xff]  ;;  %v5496_v55 = vsel %vm340_vm0, %v357_v23, %v359_v40 }
  0x23   : > { %4693 = vmatpush3.bf16.msra.mxu0 %v5319_v37  ;;  %4567 = vmatprep.subr.bf16.mxu1 %v4566_v44  ;;  %v4586_v52 = vpack.c.bf16 %v281_v38, %v280_v36  ;;  %v283_v54 = vld [vmem:[%s6545_s1 + $0x38] sm:$0xff]  ;;  %6641 = vst [vmem:[#allocation13_spill] sm:$0xff] %v5496_v55  ;;  %v366_v60 = vrot.slane %v5481_v49, 1  ;;  %v5505_v63 = vld [vmem:[%s5283_s28 + $0x88] sm:$0x3]  ;;  %v3335_v0 = vld [vmem:[%s6545_s1 + $0x2c0] sm:$0xff] }
  0x24   : > { %4695 = vmatprep.subr.bf16.mxu0 %v5344_v45  ;;  %v5515_v4 = vld [vmem:[%s5283_s28 + $0x90] sm:$0xff]  ;;  %v4590_v8 = vpack.c.bf16 %v283_v54, %v282_v53  ;;  %v284_v9 = vld [vmem:[%s6545_s1 + $0x40] sm:$0xff]  ;;  %v285_v10 = vld [vmem:[%s6545_s1 + $0x48] sm:$0xff] }
  0x25   : > { %v3337_v22 = vld [vmem:[%s6545_s1 + $0x2d0] sm:$0xff]  ;;  %v3338_v23 = vld [vmem:[%s6545_s1 + $0x2d8] sm:$0xff]  ;;  %v5549_v26 = vld [vmem:[%s5283_s28 + $0xa8] sm:$0xff]  ;;  %v4594_v33 = vpack.c.bf16 %v285_v10, %v284_v9 }
  0x26   : > { %4569 = vmatpush3.bf16.msra.mxu1 %v4566_v44  ;;  %v361_v44 = vrot.slane %v5449_v34, 1  ;;  %v286_v36 = vld [vmem:[%s6545_s1 + $0x50] sm:$0xff]  ;;  %v287_v38 = vld [vmem:[%s6545_s1 + $0x58] sm:$0xff]  ;;  %v3339_v53 = vld [vmem:[%s6545_s1 + $0x2e0] sm:$0xff] }
  0x27   : > { %4697 = vmatpush3.bf16.msra.mxu0 %v5344_v45  ;;  %4571 = vmatprep.subr.bf16.mxu1 %v4570_v50  ;;  %v3340_v54 = vld [vmem:[%s6545_s1 + $0x2e8] sm:$0xff]  ;;  %v5674_v17 = vld [vmem:[%s5283_s28 + $0xf8] sm:$0xff] }
  0x28   : > { %4699 = vmatprep.subr.bf16.mxu0 %v5360_v51  ;;  %v5500_v57 = vsel %vm340_vm0, %v361_v44, %v362_v46  ;;  %v4730_v10 = vpack.c.bf16 %v3340_v54, %v3339_v53  ;;  %v926_v54 = vrot.slane %v5309_v31, 2 }
  0x29   : > { %6642 = vst [vmem:[#allocation14_spill] sm:$0xff] %v5500_v57 }
  0x2a   : > { %4573 = vmatpush3.bf16.msra.mxu1 %v4570_v50  ;;  %v5484_v50 = vld [vmem:[%s5283_s28 + $0x80] sm:$0xff] }
  0x2b   : > { %4701 = vmatpush3.bf16.msra.mxu0 %v5360_v51  ;;  %4575 = vmatprep.subr.bf16.mxu1 %v4574_v56  ;;  %v367_v62 = vrot.slane %v5484_v50, 1  ;;  %v5663_v51 = vld [vmem:[%s5283_s28 + $0xe8] sm:$0x3] }
  0x2c   : > { %4703 = vmatprep.subr.bf16.mxu0 %v5377_v58 }
  0x2d   : > { %v5534_v16 = vsel %vm340_vm0, %v366_v60, %v367_v62  ;;  %v4598_v60 = vpack.c.bf16 %v287_v38, %v286_v36  ;;  %v291_v36 = vld [vmem:[%s6545_s1 + $0x78] sm:$0xff] }
  0x2e   : > { %4577 = vmatpush3.bf16.msra.mxu1 %v4574_v56  ;;  %v364_v56 = vrot.slane %v5472_v47, 1  ;;  %6644 = vst [vmem:[#allocation16_spill] sm:$0xff] %v5534_v16 }
  0x2f   : > { %4705 = vmatpush3.bf16.msra.mxu0 %v5377_v58  ;;  %4579 = vmatprep.subr.bf16.mxu1 %v4578_v3  ;;  %v5638_v58 = vld [vmem:[%s5283_s28 + $0xe0] sm:$0xff] }
  0x30   : > { %4707 = vmatprep.subr.bf16.mxu0 %v4706_v5  ;;  %v5530_v11 = vsel %vm340_vm0, %v362_v46, %v364_v56  ;;  %v4726_v46 = vpack.c.bf16 %v3338_v23, %v3337_v22  ;;  %v5583_v56 = vld [vmem:[%s5283_s28 + $0xc0] sm:$0xff]  ;;  %v5607_v22 = vld [vmem:[%s5283_s28 + $0xd0] sm:$0x3] }
  0x31   : > { %3859 = vmatmul.mubr.f32.vlgmr.msra.gmra.mrb[0].mxu1 %v345_v15  ;;  %6643 = vst [vmem:[#allocation15_spill] sm:$0xff] %v5530_v11  ;;  %v369_v15 = vrot.slane %v5505_v63, 1 }
  0x32   : > { %4179 = vmatmul.mubr.f32.vlgmr.msra.gmra.mrb[0].mxu0 %v350_v19  ;;  %4581 = vmatpush3.bf16.msra.mxu1 %v4578_v3  ;;  %v3336_v3 = vld [vmem:[%s6545_s1 + $0x2c8] sm:$0xff] }
  0x33   : > { %4709 = vmatpush3.bf16.msra.mxu0 %v4706_v5  ;;  %3861 = vmatprep.mubr.f32.mxu1 %v5333_v41  ;;  %v3333_v41 = vld [vmem:[%s6545_s1 + $0x2b0] sm:$0xff]  ;;  %v5518_v5 = vld [vmem:[%s5283_s28 + $0x98] sm:$0xff]  ;;  %v4722_v18 = vpack.c.bf16 %v3336_v3, %v3335_v0  ;;  %v5564_v40 = vsel %vm340_vm0, %v367_v62, %v369_v15  ;;  %v288_v62 = vld [vmem:[%s6545_s1 + $0x60] sm:$0xff]  ;;  %v381_v15 = vrot.slane %v5583_v56, 1 }
  0x34   : > { %4181 = vmatprep.mubr.f32.mxu0 %v5443_v27  ;;  %4711 = vmatprep.subr.bf16.mxu0 %v4710_v21  ;;  %v4718_v59 = vpack.c.bf16 %v3334_v48, %v3333_v41  ;;  %v372_v20 = vrot.slane %v5518_v5, 1  ;;  %6645 = vst [vmem:[#allocation17_spill] sm:$0xff] %v5564_v40  ;;  %v376_v41 = vrot.slane %v5549_v26, 1  ;;  %v289_v0 = vld [vmem:[%s6545_s1 + $0x68] sm:$0xff] }
  0x35   : > { %3862 = vmatmul.mubr.f32.gmra.mrb[2].mxu1 %v350_v19  ;;  %4583 = vmatprep.subr.bf16.mxu1 %v4582_v30  ;;  %v371_v19 = vrot.slane %v5515_v4, 1  ;;  %v4602_v23 = vpack.c.bf16 %v289_v0, %v288_v62  ;;  %v927_v62 = vrot.slane %v5312_v32, 2  ;;  %v5635_v0 = vld [vmem:[%s5283_s28 + $0xd8] sm:$0xff] }
  0x36   : > { %4182 = vmatmul.mubr.f32.gmra.mrb[2].mxu0 %v5462_v39  ;;  %3864 = vmatprep.mubr.f32.mxu1 %v5443_v27  ;;  %v5811_v27 = vld [vmem:[%s5283_s28 + $0x148] sm:$0x3] }
  0x37   : > { %4713 = vmatpush3.bf16.msra.mxu0 %v4710_v21  ;;  %4184 = vmatprep.mubr.f32.mxu0 %v5467_v42  ;;  %v5539_v21 = vld [vmem:[%s5283_s28 + $0xa0] sm:$0x3]  ;;  %v5568_v44 = vsel %vm340_vm0, %v371_v19, %v372_v20  ;;  %v5666_v45 = vsel %vm920_vm1, %v926_v54, %v927_v62 }
  0x38   : > { %4715 = vmatprep.subr.bf16.mxu0 %v4714_v43  ;;  %4585 = vmatpush3.bf16.msra.mxu1 %v4582_v30  ;;  %v5552_v30 = vld [vmem:[%s5283_s28 + $0xb0] sm:$0xff]  ;;  %6646 = vst [vmem:[#allocation18_spill] sm:$0xff] %v5568_v44 }
  0x39   : > { %3865 = vmatmul.mubr.f32.gmra.mrb[4].mxu1 %v5462_v39  ;;  %4587 = vmatprep.subr.bf16.mxu1 %v4586_v52  ;;  %v377_v48 = vrot.slane %v5552_v30, 1  ;;  %v949_v39 = vrot.slane %v5505_v63, 2 }
  0x3a   : > { %4185 = vmatmul.mubr.f32.gmra.mrb[4].mxu0 %v5496_v55  ;;  %3867 = vmatprep.mubr.f32.mxu1 %v5467_v42 }
  0x3b   : > { %4717 = vmatpush3.bf16.msra.mxu0 %v4714_v43  ;;  %4187 = vmatprep.mubr.f32.mxu0 %v5500_v57  ;;  %v374_v43 = vrot.slane %v5539_v21, 1  ;;  %v5602_v9 = vsel %vm340_vm0, %v376_v41, %v377_v48 }
  0x3c   : > { %4719 = vmatprep.subr.bf16.mxu0 %v4718_v59  ;;  %4589 = vmatpush3.bf16.msra.mxu1 %v4586_v52  ;;  %v5573_v52 = vld [vmem:[%s5283_s28 + $0xb8] sm:$0x3]  ;;  %6648 = vst [vmem:[#allocation20_spill] sm:$0xff] %v5602_v9 }
  0x3d   : > { %3868 = vmatmul.mubr.f32.gmra.mrb[6].mxu1 %v5496_v55  ;;  %4591 = vmatprep.subr.bf16.mxu1 %v4590_v8  ;;  %v5598_v3 = vsel %vm340_vm0, %v372_v20, %v374_v43  ;;  %v3342_v20 = vld [vmem:[%s6545_s1 + $0x2f8] sm:$0xff]  ;;  %v384_v43 = vrot.slane %v5607_v22, 1  ;;  %v5774_v55 = vld [vmem:[%s5283_s28 + $0x130] sm:$0x3] }
  0x3e   : > { %4188 = vmatmul.mubr.f32.gmra.mrb[6].mxu0 %v5530_v11  ;;  %3870 = vmatprep.mubr.f32.mxu1 %v5500_v57  ;;  %6647 = vst [vmem:[#allocation19_spill] sm:$0xff] %v5598_v3 }
  0x3f   : > { %4721 = vmatpush3.bf16.msra.mxu0 %v4718_v59  ;;  %4190 = vmatprep.mubr.f32.mxu0 %v5534_v16  ;;  %v5586_v59 = vld [vmem:[%s5283_s28 + $0xc8] sm:$0xff] }
  0x40   : > { %4723 = vmatprep.subr.bf16.mxu0 %v4722_v18  ;;  %4593 = vmatpush3.bf16.msra.mxu1 %v4590_v8  ;;  %v379_v8 = vrot.slane %v5573_v52, 1  ;;  %v382_v19 = vrot.slane %v5586_v59, 1 }
  0x41   : > { %3871 = vmatmul.mubr.f32.gmra.mrb[8].mxu1 %v5530_v11  ;;  %4595 = vmatprep.subr.bf16.mxu1 %v4594_v33 }
  0x42   : > { %4191 = vmatmul.mubr.f32.gmra.mrb[8].mxu0 %v5564_v40  ;;  %3873 = vmatprep.mubr.f32.mxu1 %v5534_v16  ;;  %v5626_v38 = vsel %vm340_vm0, %v377_v48, %v379_v8  ;;  %v5630_v41 = vsel %vm340_vm0, %v381_v15, %v382_v19  ;;  %v3344_v48 = vld [vmem:[%s6545_s1 + $0x308] sm:$0xff] }
  0x43   : > { %4725 = vmatpush3.bf16.msra.mxu0 %v4722_v18  ;;  %4193 = vmatprep.mubr.f32.mxu0 %v5568_v44  ;;  %v3341_v18 = vld [vmem:[%s6545_s1 + $0x2f0] sm:$0xff]  ;;  %6649 = vst [vmem:[#allocation21_spill] sm:$0xff] %v5626_v38  ;;  %6650 = vst [vmem:[#allocation22_spill] sm:$0xff] %v5630_v41  ;;  %v3280_v15 = vld [vmem:[%s6545_s1 + $0x108] sm:$0xff] }
  0x44   : > { %4727 = vmatprep.subr.bf16.mxu0 %v4726_v46  ;;  %4597 = vmatpush3.bf16.msra.mxu1 %v4594_v33  ;;  %v290_v33 = vld [vmem:[%s6545_s1 + $0x70] sm:$0xff]  ;;  %v4734_v53 = vpack.c.bf16 %v3342_v20, %v3341_v18  ;;  %v929_v18 = vrot.slane %v5386_v61, 2  ;;  %v5658_v20 = vsel %vm340_vm0, %v382_v19, %v384_v43  ;;  %v932_v61 = vrot.slane %v5398_v2, 2  ;;  %v3346_v43 = vld [vmem:[%s6545_s1 + $0x318] sm:$0xff] }
  0x45   : > { %3874 = vmatmul.mubr.f32.gmra.mrb[10].mxu1 %v5564_v40  ;;  %4599 = vmatprep.subr.bf16.mxu1 %v4598_v60  ;;  %v4606_v8 = vpack.c.bf16 %v291_v36, %v290_v33  ;;  %6651 = vst [vmem:[#allocation23_spill] sm:$0xff] %v5658_v20  ;;  %v386_v33 = vrot.slane %v5635_v0, 1  ;;  %v387_v36 = vrot.slane %v5638_v58, 1  ;;  %v3345_v19 = vld [vmem:[%s6545_s1 + $0x310] sm:$0xff]  ;;  %v5737_v40 = vld [vmem:[%s5283_s28 + $0x118] sm:$0x3] }
  0x46   : > { %4194 = vmatmul.mubr.f32.gmra.mrb[10].mxu0 %v5598_v3  ;;  %3876 = vmatprep.mubr.f32.mxu1 %v5568_v44 }
  0x47   : > { %4729 = vmatpush3.bf16.msra.mxu0 %v4726_v46  ;;  %4196 = vmatprep.mubr.f32.mxu0 %v5602_v9  ;;  %v3343_v46 = vld [vmem:[%s6545_s1 + $0x300] sm:$0xff]  ;;  %v5694_v12 = vsel %vm340_vm0, %v386_v33, %v387_v36 }
  0x48   : > { %4731 = vmatprep.subr.bf16.mxu0 %v4730_v10  ;;  %4601 = vmatpush3.bf16.msra.mxu1 %v4598_v60  ;;  %v3279_v60 = vld [vmem:[%s6545_s1 + $0x100] sm:$0xff]  ;;  %v4738_v37 = vpack.c.bf16 %v3344_v48, %v3343_v46  ;;  %v934_v46 = vrot.slane %v5404_v6, 2  ;;  %v5691_v48 = vsel %vm920_vm1, %v927_v62, %v929_v18  ;;  %6652 = vst [vmem:[#allocation24_spill] sm:$0xff] %v5694_v12  ;;  %v936_v6 = vrot.slane %v5415_v13, 2  ;;  %v5707_v62 = vld [vmem:[%s5283_s28 + $0x108] sm:$0xff]  ;;  %v5710_v18 = vld [vmem:[%s5283_s28 + $0x110] sm:$0xff] }
  0x49   : > { %3877 = vmatmul.mubr.f32.gmra.mrb[12].mxu1 %v5598_v3  ;;  %4603 = vmatprep.subr.bf16.mxu1 %v4602_v23  ;;  %v5683_v54 = vpack.c.bf16 %v3280_v15, %v3279_v60  ;;  %v392_v15 = vrot.slane %v5674_v17, 1  ;;  %v3347_v33 = vld [vmem:[%s6545_s1 + $0x320] sm:$0xff]  ;;  %v939_v3 = vrot.slane %v5437_v24, 2  ;;  %v396_v44 = vrot.slane %v5707_v62, 1 }
  0x4a   : > { %4197 = vmatmul.mubr.f32.gmra.mrb[12].mxu0 %v5626_v38  ;;  %3879 = vmatprep.mubr.f32.mxu1 %v5602_v9  ;;  %v4742_v9 = vpack.c.bf16 %v3346_v43, %v3345_v19  ;;  %v5726_v19 = vsel %vm920_vm1, %v932_v61, %v934_v46  ;;  %v5748_v46 = vld [vmem:[%s5283_s28 + $0x128] sm:$0xff] }
  0x4b   : > { %4733 = vmatpush3.bf16.msra.mxu0 %v4730_v10  ;;  %4199 = vmatprep.mubr.f32.mxu0 %v5630_v41  ;;  %v5671_v10 = vld [vmem:[%s5283_s28 + $0xf0] sm:$0xff]  ;;  %6655 = vst [vmem:[#allocation27_spill] sm:$0xff] %v5726_v19 }
  0x4c   : > { %4735 = vmatprep.subr.bf16.mxu0 %v4734_v53  ;;  %4605 = vmatpush3.bf16.msra.mxu1 %v4602_v23  ;;  %v389_v23 = vrot.slane %v5663_v51, 1  ;;  %v391_v60 = vrot.slane %v5671_v10, 1 }
  0x4d   : > { %3880 = vmatmul.mubr.f32.gmra.mrb[14].mxu1 %v5626_v38  ;;  %4607 = vmatprep.subr.bf16.mxu1 %v4606_v8  ;;  %v5699_v38 = vld [vmem:[%s5283_s28 + $0x100] sm:$0x3] }
  0x4e   : > { %4200 = vmatmul.mubr.f32.gmra.mrb[14].mxu0 %v5658_v20  ;;  %3882 = vmatprep.mubr.f32.mxu1 %v5630_v41  ;;  %v5702_v41 = vsel %vm920_vm1, %v931_v25, %v932_v61  ;;  %v3348_v25 = vld [vmem:[%s6545_s1 + $0x328] sm:$0xff]  ;;  %v394_v43 = vrot.slane %v5699_v38, 1  ;;  %v941_v61 = vrot.slane %v5449_v34, 2 }
  0x4f   : > { %4737 = vmatpush3.bf16.msra.mxu0 %v4734_v53  ;;  %4258 = vmatprep.mubr.f32.mxu0 %v5666_v45  ;;  %6653 = vst [vmem:[#allocation25_spill] sm:$0xff] %v5702_v41  ;;  %v937_v53 = vrot.slane %v5418_v14, 2  ;;  %v4746_v24 = vpack.c.bf16 %v3348_v25, %v3347_v33  ;;  %v399_v33 = vrot.slane %v5737_v40, 1  ;;  %v944_v25 = vrot.slane %v5472_v47, 2 }
  0x50   : > { %4739 = vmatprep.subr.bf16.mxu0 %v4738_v37  ;;  %4609 = vmatpush3.bf16.msra.mxu1 %v4606_v8  ;;  %v5723_v8 = vsel %vm340_vm0, %v387_v36, %v389_v23  ;;  %v5745_v23 = vld [vmem:[%s5283_s28 + $0x120] sm:$0xff]  ;;  %v5760_v16 = vsel %vm340_vm0, %v392_v15, %v394_v43  ;;  %v946_v47 = vrot.slane %v5481_v49, 2  ;;  %v947_v43 = vrot.slane %v5484_v50, 2 }
  0x51   : > { %3883 = vmatmul.mubr.f32.gmra.mrb[16].mxu1 %v5658_v20  ;;  %4611 = vmatprep.subr.bf16.mxu1 %v5683_v54  ;;  %6654 = vst [vmem:[#allocation26_spill] sm:$0xff] %v5723_v8  ;;  %v5731_v20 = vsel %vm340_vm0, %v391_v60, %v392_v15  ;;  %v5740_v36 = vsel %vm920_vm1, %v936_v6, %v937_v53  ;;  %v3349_v60 = vld [vmem:[%s6545_s1 + $0x330] sm:$0xff]  ;;  %v3350_v6 = vld [vmem:[%s6545_s1 + $0x338] sm:$0xff]  ;;  %6658 = vst [vmem:[#allocation30_spill] sm:$0xff] %v5760_v16  ;;  %v401_v57 = vrot.slane %v5745_v23, 1 }
  0x52   : > { %4259 = vmatmul.mubr.f32.vlgmr.msra.gmra.mrb[0].mxu0 %v5691_v48  ;;  %3885 = vmatprep.mubr.f32.mxu1 %v5694_v12  ;;  %6656 = vst [vmem:[#allocation28_spill] sm:$0xff] %v5731_v20  ;;  %v397_v12 = vrot.slane %v5710_v18, 1  ;;  %6657 = vst [vmem:[#allocation29_spill] sm:$0xff] %v5740_v36 }
  0x53   : > { %4741 = vmatpush3.bf16.msra.mxu0 %v4738_v37  ;;  %4261 = vmatprep.mubr.f32.mxu0 %v5702_v41  ;;  %v942_v37 = vrot.slane %v5452_v35, 2 }
  0x54   : > { %4743 = vmatprep.subr.bf16.mxu0 %v4742_v9  ;;  %v5769_v11 = vsel %vm340_vm0, %v396_v44, %v397_v12  ;;  %v4750_v44 = vpack.c.bf16 %v3350_v6, %v3349_v60  ;;  %v5797_v42 = vsel %vm340_vm0, %v397_v12, %v399_v33  ;;  %v404_v6 = vrot.slane %v5774_v55, 1 }
  0x55   : > { %3886 = vmatmul.mubr.f32.gmra.mrb[18].mxu1 %v5723_v8  ;;  %v5766_v8 = vsel %vm920_vm1, %v937_v53, %v939_v3  ;;  %6660 = vst [vmem:[#allocation32_spill] sm:$0xff] %v5769_v11  ;;  %v5777_v15 = vsel %vm920_vm1, %v941_v61, %v942_v37  ;;  %v5782_v3 = vld [vmem:[%s5283_s28 + $0x138] sm:$0xff]  ;;  %v3351_v53 = vld [vmem:[%s6545_s1 + $0x340] sm:$0xff]  ;;  %v3352_v61 = vld [vmem:[%s6545_s1 + $0x348] sm:$0xff]  ;;  %v5800_v60 = vsel %vm920_vm1, %v942_v37, %v944_v25  ;;  %v951_v37 = vrot.slane %v5515_v4, 2 }
  0x56   : > { %4262 = vmatmul.mubr.f32.gmra.mrb[2].mxu0 %v5726_v19  ;;  %3888 = vmatprep.mubr.f32.mxu1 %v5731_v20  ;;  %6659 = vst [vmem:[#allocation31_spill] sm:$0xff] %v5766_v8  ;;  %v402_v20 = vrot.slane %v5748_v46, 1  ;;  %6661 = vst [vmem:[#allocation33_spill] sm:$0xff] %v5777_v15  ;;  %v406_v7 = vrot.slane %v5782_v3, 1  ;;  %v5814_v12 = vsel %vm920_vm1, %v946_v47, %v947_v43  ;;  %v952_v33 = vrot.slane %v5518_v5, 2  ;;  %v5819_v25 = vld [vmem:[%s5283_s28 + $0x150] sm:$0xff] }
  0x57   : > { %4264 = vmatprep.mubr.f32.mxu0 %v5740_v36  ;;  %4745 = vmatpush3.bf16.msra.mxu0 %v4742_v9  ;;  %v5785_v9 = vld [vmem:[%s5283_s28 + $0x140] sm:$0xff]  ;;  %6662 = vst [vmem:[#allocation34_spill] sm:$0xff] %v5797_v42  ;;  %6663 = vst [vmem:[#allocation35_spill] sm:$0xff] %v5800_v60  ;;  %v4754_v63 = vpack.c.bf16 %v3352_v61, %v3351_v53  ;;  %v3354_v47 = vld [vmem:[%s6545_s1 + $0x358] sm:$0xff]  ;;  %v409_v53 = vrot.slane %v5811_v27, 1  ;;  %v954_v61 = vrot.slane %v5539_v21, 2 }
  0x58   : > { %4747 = vmatprep.subr.bf16.mxu0 %v4746_v24  ;;  %6665 = vst [vmem:[#allocation37_spill] sm:$0xff] %v5814_v12  ;;  %v956_v21 = vrot.slane %v5549_v26, 2 }
  0x59   : > { %3889 = vmatmul.mubr.f32.gmra.mrb[20].mxu1 %v5760_v16  ;;  %v5805_v16 = vsel %vm340_vm0, %v401_v57, %v402_v20  ;;  %v5822_v57 = vld [vmem:[%s5283_s28 + $0x158] sm:$0xff]  ;;  %v5874_v19 = vsel %vm920_vm1, %v952_v33, %v954_v61 }
  0x5a   : > { %4265 = vmatmul.mubr.f32.gmra.mrb[4].mxu0 %v5766_v8  ;;  %3891 = vmatprep.mubr.f32.mxu1 %v5769_v11  ;;  %6664 = vst [vmem:[#allocation36_spill] sm:$0xff] %v5805_v16  ;;  %v407_v11 = vrot.slane %v5785_v9, 1  ;;  %v412_v36 = vrot.slane %v5822_v57, 1  ;;  %6670 = vst [vmem:[#allocation42_spill] sm:$0xff] %v5874_v19 }
  0x5b   : > { %4267 = vmatprep.mubr.f32.mxu0 %v5777_v15  ;;  %4749 = vmatpush3.bf16.msra.mxu0 %v4746_v24  ;;  %v3353_v24 = vld [vmem:[%s6545_s1 + $0x350] sm:$0xff]  ;;  %v5834_v15 = vsel %vm340_vm0, %v402_v20, %v404_v6  ;;  %v5851_v20 = vsel %vm920_vm1, %v951_v37, %v952_v33  ;;  %v957_v6 = vrot.slane %v5552_v30, 2  ;;  %v961_v33 = vrot.slane %v5583_v56, 2 }
  0x5c   : > { %4751 = vmatprep.subr.bf16.mxu0 %v4750_v44  ;;  %6666 = vst [vmem:[#allocation38_spill] sm:$0xff] %v5834_v15  ;;  %v5843_v8 = vsel %vm340_vm0, %v406_v7, %v407_v11  ;;  %v4758_v7 = vpack.c.bf16 %v3354_v47, %v3353_v24  ;;  %v5871_v37 = vsel %vm340_vm0, %v407_v11, %v409_v53  ;;  %v962_v53 = vrot.slane %v5586_v59, 2 }
  0x5d   : > { %3892 = vmatmul.mubr.f32.gmra.mrb[22].mxu1 %v5797_v42  ;;  %v5840_v42 = vsel %vm920_vm1, %v947_v43, %v949_v39  ;;  %6668 = vst [vmem:[#allocation40_spill] sm:$0xff] %v5843_v8  ;;  %v5859_v39 = vld [vmem:[%s5283_s28 + $0x170] sm:$0xff]  ;;  %v3355_v43 = vld [vmem:[%s6545_s1 + $0x360] sm:$0xff]  ;;  %6669 = vst [vmem:[#allocation41_spill] sm:$0xff] %v5871_v37  ;;  %v5888_v11 = vsel %vm920_vm1, %v956_v21, %v957_v6 }
  0x5e   : > { %4268 = vmatmul.mubr.f32.gmra.mrb[6].mxu0 %v5800_v60  ;;  %3894 = vmatprep.mubr.f32.mxu1 %v5805_v16  ;;  %6667 = vst [vmem:[#allocation39_spill] sm:$0xff] %v5840_v42  ;;  %v411_v60 = vrot.slane %v5819_v25, 1  ;;  %v5848_v16 = vld [vmem:[%s5283_s28 + $0x160] sm:$0x3] }
  0x5f   : > { %4270 = vmatprep.mubr.f32.mxu0 %v5814_v12  ;;  %4753 = vmatpush3.bf16.msra.mxu0 %v4750_v44  ;;  %v5856_v12 = vld [vmem:[%s5283_s28 + $0x168] sm:$0xff]  ;;  %v414_v24 = vrot.slane %v5848_v16, 1 }
  0x60   : > { %4755 = vmatprep.subr.bf16.mxu0 %v4754_v63  ;;  %v3356_v44 = vld [vmem:[%s6545_s1 + $0x368] sm:$0xff]  ;;  %v5879_v47 = vsel %vm340_vm0, %v411_v60, %v412_v36  ;;  %v416_v41 = vrot.slane %v5856_v12, 1  ;;  %v3358_v60 = vld [vmem:[%s6545_s1 + $0x378] sm:$0xff] }
  0x61   : > { %3895 = vmatmul.mubr.f32.gmra.mrb[24].mxu1 %v5834_v15  ;;  %6671 = vst [vmem:[#allocation43_spill] sm:$0xff] %v5879_v47  ;;  %v959_v15 = vrot.slane %v5573_v52, 2  ;;  %v4762_v61 = vpack.c.bf16 %v3356_v44, %v3355_v43  ;;  %v3357_v52 = vld [vmem:[%s6545_s1 + $0x370] sm:$0xff] }
  0x62   : > { %4271 = vmatmul.mubr.f32.gmra.mrb[8].mxu0 %v5840_v42  ;;  %3897 = vmatprep.mubr.f32.mxu1 %v5843_v8  ;;  %v417_v42 = vrot.slane %v5859_v39, 1  ;;  %v5885_v8 = vld [vmem:[%s5283_s28 + $0x178] sm:$0x3] }
  0x63   : > { %4273 = vmatprep.mubr.f32.mxu0 %v5851_v20  ;;  %4757 = vmatpush3.bf16.msra.mxu0 %v4754_v63  ;;  %v5902_v63 = vsel %vm340_vm0, %v412_v36, %v414_v24  ;;  %v419_v21 = vrot.slane %v5885_v8, 1  ;;  %v5907_v43 = vsel %vm920_vm1, %v957_v6, %v959_v15  ;;  %v967_v36 = vrot.slane %v5638_v58, 2  ;;  %v3359_v15 = vld [vmem:[%s6545_s1 + $0x380] sm:$0xff] }
  0x64   : > { %4759 = vmatprep.subr.bf16.mxu0 %v4758_v7  ;;  %6672 = vst [vmem:[#allocation44_spill] sm:$0xff] %v5902_v63  ;;  %v5910_v44 = vsel %vm340_vm0, %v416_v41, %v417_v42  ;;  %v4766_v24 = vpack.c.bf16 %v3358_v60, %v3357_v52  ;;  %v971_v52 = vrot.slane %v5671_v10, 2  ;;  %v972_v60 = vrot.slane %v5674_v17, 2 }
  0x65   : > { %3898 = vmatmul.mubr.f32.gmra.mrb[26].mxu1 %v5871_v37  ;;  %6673 = vst [vmem:[#allocation45_spill] sm:$0xff] %v5910_v44  ;;  %v964_v37 = vrot.slane %v5607_v22, 2  ;;  %v3360_v22 = vld [vmem:[%s6545_s1 + $0x388] sm:$0xff]  ;;  %v5928_v41 = vsel %vm340_vm0, %v417_v42, %v419_v21  ;;  %v3281_v42 = vld [vmem:[%s6545_s1 + $0x110] sm:$0xff]  ;;  %v977_v21 = vrot.slane %v5710_v18, 2 }
  0x66   : > { %4274 = vmatmul.mubr.f32.gmra.mrb[10].mxu0 %v5874_v19  ;;  %3900 = vmatprep.mubr.f32.mxu1 %v5879_v47  ;;  %v5914_v19 = vsel %vm920_vm1, %v961_v33, %v962_v53  ;;  %v966_v47 = vrot.slane %v5635_v0, 2  ;;  %6674 = vst [vmem:[#allocation46_spill] sm:$0xff] %v5928_v41 }
  0x67   : > { %4276 = vmatprep.mubr.f32.mxu0 %v5888_v11  ;;  %4761 = vmatpush3.bf16.msra.mxu0 %v4758_v7  ;;  %v5932_v6 = vsel %vm920_vm1, %v962_v53, %v964_v37  ;;  %v969_v7 = vrot.slane %v5663_v51, 2  ;;  %v3282_v51 = vld [vmem:[%s6545_s1 + $0x118] sm:$0xff]  ;;  %v5957_v53 = vsel %vm920_vm1, %v971_v52, %v972_v60 }
  0x68   : > { %4763 = vmatprep.subr.bf16.mxu0 %v4762_v61  ;;  %v5936_v33 = vsel %vm920_vm1, %v966_v47, %v967_v36  ;;  %v974_v47 = vrot.slane %v5699_v38, 2  ;;  %v3284_v38 = vld [vmem:[%s6545_s1 + $0x128] sm:$0xff] }
  0x69   : > { %3901 = vmatmul.mubr.f32.gmra.mrb[28].mxu1 %v5902_v63  ;;  %v5953_v37 = vsel %vm920_vm1, %v967_v36, %v969_v7  ;;  %v982_v7 = vrot.slane %v5748_v46, 2  ;;  %v6065_v63 = vld [vmem:[%s5283_s28 + $0x190] sm:$0x3] }
  0x6a   : > { %4277 = vmatmul.mubr.f32.gmra.mrb[12].mxu0 %v5907_v43  ;;  %3903 = vmatprep.mubr.f32.mxu1 %v5910_v44  ;;  %v5940_v44 = vpack.c.bf16 %v3360_v22, %v3359_v15  ;;  %v4614_v15 = vpack.c.bf16 %v3282_v51, %v3281_v42  ;;  %v5974_v36 = vsel %vm920_vm1, %v972_v60, %v974_v47  ;;  %v981_v22 = vrot.slane %v5745_v23, 2 }
  0x6b   : > { %4279 = vmatprep.mubr.f32.mxu0 %v5914_v19  ;;  %4765 = vmatpush3.bf16.msra.mxu0 %v4762_v61  ;;  %v976_v61 = vrot.slane %v5707_v62, 2  ;;  %v986_v42 = vrot.slane %v5782_v3, 2  ;;  %v987_v51 = vrot.slane %v5785_v9, 2 }
  0x6c   : > { %4767 = vmatprep.subr.bf16.mxu0 %v4766_v24  ;;  %v5997_v60 = vsel %vm920_vm1, %v981_v22, %v982_v7 }
  0x6d   : > { %3904 = vmatmul.mubr.f32.gmra.mrb[30].mxu1 %v5928_v41  ;;  %v6044_v41 = vld [vmem:[%s5283_s28 + $0x188] sm:$0xff] }
  0x6e   : > { %4280 = vmatmul.mubr.f32.gmra.mrb[14].mxu0 %v5932_v6  ;;  %3938 = vmatprep.mubr.f32.mxu1 %v5302_v28  ;;  %v3283_v28 = vld [vmem:[%s6545_s1 + $0x120] sm:$0xff] }
  0x6f   : > { %4282 = vmatprep.mubr.f32.mxu0 %v5936_v33  ;;  %4769 = vmatpush3.bf16.msra.mxu0 %v4766_v24  ;;  %v5978_v24 = vsel %vm920_vm1, %v976_v61, %v977_v21  ;;  %v4618_v52 = vpack.c.bf16 %v3284_v38, %v3283_v28  ;;  %v3287_v61 = vld [vmem:[%s6545_s1 + $0x140] sm:$0xff]  ;;  %v6016_v28 = vsel %vm920_vm1, %v986_v42, %v987_v51  ;;  %v991_v38 = vrot.slane %v5819_v25, 2 }
  0x70   : > { %4771 = vmatprep.subr.bf16.mxu0 %v5940_v44  ;;  %v997_v42 = vrot.slane %v5859_v39, 2 }
  0x71   : > { %3939 = vmatmul.mubr.f32.vlgmr.msra.gmra.mrb[0].mxu1 %v5305_v29  ;;  %v979_v29 = vrot.slane %v5737_v40, 2 }
  0x72   : > { %4283 = vmatmul.mubr.f32.gmra.mrb[16].mxu0 %v5953_v37  ;;  %4613 = vmatpush3.bf16.msra.mxu1 %v5683_v54  ;;  %v3286_v54 = vld [vmem:[%s6545_s1 + $0x138] sm:$0xff] }
  0x73   : > { %3941 = vmatprep.mubr.f32.mxu1 %v5309_v31  ;;  %4285 = vmatprep.mubr.f32.mxu0 %v5957_v53  ;;  %v3285_v31 = vld [vmem:[%s6545_s1 + $0x130] sm:$0xff]  ;;  %v5993_v40 = vsel %vm920_vm1, %v977_v21, %v979_v29  ;;  %v3288_v21 = vld [vmem:[%s6545_s1 + $0x148] sm:$0xff]  ;;  %v992_v29 = vrot.slane %v5822_v57, 2 }
  0x74   : > { %4615 = vmatprep.subr.bf16.mxu1 %v4614_v15  ;;  %v4622_v47 = vpack.c.bf16 %v3286_v54, %v3285_v31  ;;  %v4626_v22 = vpack.c.bf16 %v3288_v21, %v3287_v61  ;;  %v994_v31 = vrot.slane %v5848_v16, 2  ;;  %v6040_v61 = vld [vmem:[%s5283_s28 + $0x180] sm:$0xff] }
  0x75   : > { %3942 = vmatmul.mubr.f32.gmra.mrb[2].mxu1 %v5312_v32  ;;  %v984_v32 = vrot.slane %v5774_v55, 2  ;;  %v6035_v54 = vsel %vm920_vm1, %v991_v38, %v992_v29  ;;  %v3291_v16 = vld [vmem:[%s6545_s1 + $0x160] sm:$0xff] }
  0x76   : > { %4286 = vmatmul.mubr.f32.gmra.mrb[18].mxu0 %v5974_v36  ;;  %3944 = vmatprep.mubr.f32.mxu1 %v5395_v1 }
  0x77   : > { %4288 = vmatprep.mubr.f32.mxu0 %v5978_v24  ;;  %4617 = vmatpush3.bf16.msra.mxu1 %v4614_v15  ;;  %v6012_v55 = vsel %vm920_vm1, %v982_v7, %v984_v32  ;;  %v989_v15 = vrot.slane %v5811_v27, 2  ;;  %v3289_v7 = vld [vmem:[%s6545_s1 + $0x150] sm:$0xff]  ;;  %v3290_v27 = vld [vmem:[%s6545_s1 + $0x158] sm:$0xff]  ;;  %v996_v32 = vrot.slane %v5856_v12, 2 }
  0x78   : > { %4619 = vmatprep.subr.bf16.mxu1 %v4618_v52  ;;  %v4630_v21 = vpack.c.bf16 %v3290_v27, %v3289_v7  ;;  %v1865_v7 = vrot.slane %v6040_v61, 2  ;;  %v1866_v27 = vrot.slane %v6044_v41, 2 }
  0x79   : > { %3945 = vmatmul.mubr.f32.gmra.mrb[4].mxu1 %v5398_v2  ;;  %v6060_v38 = vsel %vm920_vm1, %v996_v32, %v997_v42 }
  0x7a   : > { %4289 = vmatmul.mubr.f32.gmra.mrb[20].mxu0 %v5993_v40  ;;  %3947 = vmatprep.mubr.f32.mxu1 %v5415_v13  ;;  %6676 = vst [vmem:[#allocation48_spill] sm:$0xff] %v6060_v38  ;;  %v6082_v32 = vsel %vm920_vm1, %v1865_v7, %v1866_v27  ;;  %v3362_v7 = vld [vmem:[%s6545_s1 + $0x398] sm:$0xff] }
  0x7b   : > { %4291 = vmatprep.mubr.f32.mxu0 %v5997_v60  ;;  %4621 = vmatpush3.bf16.msra.mxu1 %v4618_v52  ;;  %v6031_v52 = vsel %vm920_vm1, %v987_v51, %v989_v15  ;;  %v3292_v51 = vld [vmem:[%s6545_s1 + $0x168] sm:$0xff]  ;;  %v999_v15 = vrot.slane %v5885_v8, 2  ;;  %v3294_v8 = vld [vmem:[%s6545_s1 + $0x178] sm:$0xff]  ;;  %6677 = vst [vmem:[#allocation49_spill] sm:$0xff] %v6082_v32 }
  0x7c   : > { %4623 = vmatprep.subr.bf16.mxu1 %v4622_v47  ;;  %6675 = vst [vmem:[#allocation47_spill] sm:$0xff] %v6031_v52 }
  0x7d   : > { %3948 = vmatmul.mubr.f32.gmra.mrb[6].mxu1 %v5418_v14 }
  0x7e   : > { %4292 = vmatmul.mubr.f32.gmra.mrb[22].mxu0 %v6012_v55  ;;  %3950 = vmatprep.mubr.f32.mxu1 %v5449_v34 }
  0x7f   : > { %4294 = vmatprep.mubr.f32.mxu0 %v6016_v28  ;;  %4625 = vmatpush3.bf16.msra.mxu1 %v4622_v47  ;;  %v6056_v47 = vsel %vm920_vm1, %v992_v29, %v994_v31  ;;  %v3293_v29 = vld [vmem:[%s6545_s1 + $0x170] sm:$0xff]  ;;  %v1868_v31 = vrot.slane %v6065_v63, 2 }
  0x80   : > { %4627 = vmatprep.subr.bf16.mxu1 %v4626_v22 }
  0x81   : > { %3951 = vmatmul.mubr.f32.gmra.mrb[8].mxu1 %v5452_v35 }
  0x82   : > { %4295 = vmatmul.mubr.f32.gmra.mrb[24].mxu0 %v6031_v52  ;;  %3953 = vmatprep.mubr.f32.mxu1 %v5481_v49  ;;  %v4634_v52 = vpack.c.bf16 %v3292_v51, %v3291_v16  ;;  %v4638_v16 = vpack.c.bf16 %v3294_v8, %v3293_v29  ;;  %v3295_v51 = vld [vmem:[%s6545_s1 + $0x180] sm:$0xff]  ;;  %v3365_v29 = vld [vmem:[%s6545_s1 + $0x3b0] sm:$0xff]  ;;  %v3366_v8 = vld [vmem:[%s6545_s1 + $0x3b8] sm:$0xff] }
  0x83   : > { %4297 = vmatprep.mubr.f32.mxu0 %v6035_v54  ;;  %4629 = vmatpush3.bf16.msra.mxu1 %v4626_v22  ;;  %v6078_v22 = vsel %vm920_vm1, %v997_v42, %v999_v15  ;;  %v6095_v42 = vsel %vm920_vm1, %v1866_v27, %v1868_v31  ;;  %v3361_v15 = vld [vmem:[%s6545_s1 + $0x390] sm:$0xff]  ;;  %v3364_v27 = vld [vmem:[%s6545_s1 + $0x3a8] sm:$0xff]  ;;  %v3370_v31 = vld [vmem:[%s6545_s1 + $0x3d8] sm:$0xff] }
  0x84   : > { %4631 = vmatprep.subr.bf16.mxu1 %v4630_v21  ;;  %6678 = vst [vmem:[#allocation50_spill] sm:$0xff] %v6095_v42 }
  0x85   : > { %3954 = vmatmul.mubr.f32.gmra.mrb[10].mxu1 %v5484_v50 }
  0x86   : > { %4298 = vmatmul.mubr.f32.gmra.mrb[26].mxu0 %v6056_v47  ;;  %3956 = vmatprep.mubr.f32.mxu1 %v5515_v4 }
  0x87   : > { %4300 = vmatprep.mubr.f32.mxu0 %v6060_v38  ;;  %4633 = vmatpush3.bf16.msra.mxu1 %v4630_v21  ;;  %v3296_v38 = vld [vmem:[%s6545_s1 + $0x188] sm:$0xff] }
  0x88   : > { %4635 = vmatprep.subr.bf16.mxu1 %v4634_v52  ;;  %v6097_v21 = vpack.c.bf16 %v3296_v38, %v3295_v51  ;;  %v3363_v38 = vld [vmem:[%s6545_s1 + $0x3a0] sm:$0xff]  ;;  %v3374_v51 = vld [vmem:[%s6545_s1 + $0x3f8] sm:$0xff] }
  0x89   : > { %3957 = vmatmul.mubr.f32.gmra.mrb[12].mxu1 %v5518_v5 }
  0x8a   : > { %4301 = vmatmul.mubr.f32.gmra.mrb[28].mxu0 %v6078_v22  ;;  %3959 = vmatprep.mubr.f32.mxu1 %v5549_v26 }
  0x8b   : > { %4303 = vmatprep.mubr.f32.mxu0 %v6082_v32  ;;  %4637 = vmatpush3.bf16.msra.mxu1 %v4634_v52  ;;  %v4774_v52 = vpack.c.bf16 %v3362_v7, %v3361_v15  ;;  %v5132_v15 = vld [vmem:[%s5283_s28 + $0x8] sm:$0xff] }
  0x8c   : > { %4639 = vmatprep.subr.bf16.mxu1 %v4638_v16  ;;  %v922_v7 = vrot.slane %v5132_v15, 2  ;;  %v3309_v15 = vld [vmem:[%s6545_s1 + $0x1f0] sm:$0xff] }
  0x8d   : > { %3960 = vmatmul.mubr.f32.gmra.mrb[14].mxu1 %v5552_v30 }
  0x8e   : > { %4304 = vmatmul.mubr.f32.gmra.mrb[30].mxu0 %v6095_v42  ;;  %3962 = vmatprep.mubr.f32.mxu1 %v5583_v56  ;;  %v6723_v42 = vld [vmem:[#allocation46_spill] sm:$0xff] }
  0x8f   : > { %4338 = vmatprep.mubr.f32.mxu0 %v5395_v1  ;;  %4641 = vmatpush3.bf16.msra.mxu1 %v4638_v16  ;;  %v4778_v1 = vpack.c.bf16 %v3364_v27, %v3363_v38  ;;  %v3372_v16 = vld [vmem:[%s6545_s1 + $0x3e8] sm:$0xff]  ;;  %v3375_v38 = vld [vmem:[%s6545_s1 + $0x400] sm:$0xff]  ;;  %v5133_v27 = vld [vmem:[%s5283_s28 + $0x10] sm:$0x3] }
  0x90   : > { %4643 = vmatprep.subr.bf16.mxu1 %v6097_v21 }
  0x91   : > { %3963 = vmatmul.mubr.f32.gmra.mrb[16].mxu1 %v5586_v59 }
  0x92   : > { %4339 = vmatmul.mubr.f32.vlgmr.msra.gmra.mrb[0].mxu0 %v5398_v2  ;;  %3965 = vmatprep.mubr.f32.mxu1 %v5635_v0  ;;  %v4782_v2 = vpack.c.bf16 %v3366_v8, %v3365_v29  ;;  %v3297_v8 = vld [vmem:[%s6545_s1 + $0x190] sm:$0xff] }
  0x93   : > { %4773 = vmatpush3.bf16.msra.mxu0 %v5940_v44  ;;  %4341 = vmatprep.mubr.f32.mxu0 %v5415_v13  ;;  %v3367_v13 = vld [vmem:[%s6545_s1 + $0x3c0] sm:$0xff]  ;;  %v3368_v44 = vld [vmem:[%s6545_s1 + $0x3c8] sm:$0xff] }
  0x94   : > { %4775 = vmatprep.subr.bf16.mxu0 %v4774_v52 }
  0x95   : > { %3966 = vmatmul.mubr.f32.gmra.mrb[18].mxu1 %v5638_v58 }
  0x96   : > { %4342 = vmatmul.mubr.f32.gmra.mrb[2].mxu0 %v5418_v14  ;;  %3968 = vmatprep.mubr.f32.mxu1 %v5671_v10  ;;  %v4786_v14 = vpack.c.bf16 %v3368_v44, %v3367_v13  ;;  %v3299_v13 = vld [vmem:[%s6545_s1 + $0x1a0] sm:$0xff]  ;;  %v3300_v44 = vld [vmem:[%s6545_s1 + $0x1a8] sm:$0xff] }
  0x97   : > { %4344 = vmatprep.mubr.f32.mxu0 %v5449_v34  ;;  %4777 = vmatpush3.bf16.msra.mxu0 %v4774_v52  ;;  %v3369_v34 = vld [vmem:[%s6545_s1 + $0x3d0] sm:$0xff] }
  0x98   : > { %4779 = vmatprep.subr.bf16.mxu0 %v4778_v1 }
  0x99   : > { %3969 = vmatmul.mubr.f32.gmra.mrb[20].mxu1 %v5674_v17 }
  0x9a   : > { %4345 = vmatmul.mubr.f32.gmra.mrb[4].mxu0 %v5452_v35  ;;  %3971 = vmatprep.mubr.f32.mxu1 %v5707_v62  ;;  %v4790_v35 = vpack.c.bf16 %v3370_v31, %v3369_v34  ;;  %v6682_v34 = vld [vmem:[#allocation31_spill] sm:$0xff]  ;;  %v3305_v31 = vld [vmem:[%s6545_s1 + $0x1d0] sm:$0xff] }
  0x9b   : > { %4347 = vmatprep.mubr.f32.mxu0 %v5481_v49  ;;  %4781 = vmatpush3.bf16.msra.mxu0 %v4778_v1  ;;  %v3371_v49 = vld [vmem:[%s6545_s1 + $0x3e0] sm:$0xff]  ;;  %v924_v1 = vrot.slane %v5133_v27, 2 }
  0x9c   : > { %4783 = vmatprep.subr.bf16.mxu0 %v4782_v2  ;;  %v6266_v27 = vld [vmem:[%s5283_s28 + $0x1a0] sm:$0xff] }
  0x9d   : > { %3972 = vmatmul.mubr.f32.gmra.mrb[22].mxu1 %v5710_v18 }
  0x9e   : > { %4348 = vmatmul.mubr.f32.gmra.mrb[6].mxu0 %v5484_v50  ;;  %3974 = vmatprep.mubr.f32.mxu1 %v5745_v23  ;;  %v4794_v50 = vpack.c.bf16 %v3372_v16, %v3371_v49  ;;  %v6684_v16 = vld [vmem:[#allocation35_spill] sm:$0xff] }
  0x9f   : > { %4350 = vmatprep.mubr.f32.mxu0 %v5515_v4  ;;  %4785 = vmatpush3.bf16.msra.mxu0 %v4782_v2  ;;  %v3373_v4 = vld [vmem:[%s6545_s1 + $0x3f0] sm:$0xff] }
  0xa0   : > { %4787 = vmatprep.subr.bf16.mxu0 %v4786_v14  ;;  %v4798_v52 = vpack.c.bf16 %v3374_v51, %v3373_v4  ;;  %v3308_v4 = vld [vmem:[%s6545_s1 + $0x1e8] sm:$0xff]  ;;  %v6685_v51 = vld [vmem:[#allocation37_spill] sm:$0xff] }
  0xa1   : > { %3975 = vmatmul.mubr.f32.gmra.mrb[24].mxu1 %v5748_v46 }
  0xa2   : > { %4351 = vmatmul.mubr.f32.gmra.mrb[8].mxu0 %v5518_v5  ;;  %3977 = vmatprep.mubr.f32.mxu1 %v5782_v3  ;;  %v5131_v5 = vld [vmem:[%s5283_s28] sm:$0xff] }
  0xa3   : > { %4353 = vmatprep.mubr.f32.mxu0 %v5549_v26  ;;  %4789 = vmatpush3.bf16.msra.mxu0 %v4786_v14  ;;  %v921_v26 = vrot.slane %v5131_v5, 2  ;;  %v3302_v14 = vld [vmem:[%s6545_s1 + $0x1b8] sm:$0xff] }
  0xa4   : > { %4791 = vmatprep.subr.bf16.mxu0 %v4790_v35 }
  0xa5   : > { %3978 = vmatmul.mubr.f32.gmra.mrb[26].mxu1 %v5785_v9 }
  0xa6   : > { %4354 = vmatmul.mubr.f32.gmra.mrb[10].mxu0 %v5552_v30  ;;  %3980 = vmatprep.mubr.f32.mxu1 %v5819_v25  ;;  %v3376_v30 = vld [vmem:[%s6545_s1 + $0x408] sm:$0xff] }
  0xa7   : > { %4356 = vmatprep.mubr.f32.mxu0 %v5583_v56  ;;  %4793 = vmatpush3.bf16.msra.mxu0 %v4790_v35  ;;  %v923_v56 = vsel %vm920_vm1, %v921_v26, %v922_v7  ;;  %v6185_v29 = vpack.c.bf16 %v3376_v30, %v3375_v38  ;;  %v3306_v35 = vld [vmem:[%s6545_s1 + $0x1d8] sm:$0xff]  ;;  %v6686_v26 = vld [vmem:[#allocation39_spill] sm:$0xff]  ;;  %v6687_v30 = vld [vmem:[#allocation42_spill] sm:$0xff] }
  0xa8   : > { %4795 = vmatprep.subr.bf16.mxu0 %v4794_v50  ;;  %v4662_v49 = vpack.c.bf16 %v3306_v35, %v3305_v31  ;;  %v3384_v31 = vld [vmem:[%s6545_s1 + $0x448] sm:$0xff] }
  0xa9   : > { %3981 = vmatmul.mubr.f32.gmra.mrb[28].mxu1 %v5822_v57  ;;  %v6694_v35 = vld [vmem:[#allocation15_spill] sm:$0xff] }
  0xaa   : > { %4357 = vmatmul.mubr.f32.gmra.mrb[12].mxu0 %v5586_v59  ;;  %3983 = vmatprep.mubr.f32.mxu1 %v5856_v12  ;;  %v3298_v59 = vld [vmem:[%s6545_s1 + $0x198] sm:$0xff] }
  0xab   : > { %4359 = vmatprep.mubr.f32.mxu0 %v5635_v0  ;;  %4797 = vmatpush3.bf16.msra.mxu0 %v4794_v50  ;;  %v925_v0 = vsel %vm920_vm1, %v922_v7, %v924_v1  ;;  %v4646_v2 = vpack.c.bf16 %v3298_v59, %v3297_v8  ;;  %v3307_v50 = vld [vmem:[%s6545_s1 + $0x1e0] sm:$0xff]  ;;  %v3310_v7 = vld [vmem:[%s6545_s1 + $0x1f8] sm:$0xff]  ;;  %v3377_v1 = vld [vmem:[%s6545_s1 + $0x410] sm:$0xff] }
  0xac   : > { %4799 = vmatprep.subr.bf16.mxu0 %v4798_v52  ;;  %v4666_v5 = vpack.c.bf16 %v3308_v4, %v3307_v50  ;;  %v4670_v38 = vpack.c.bf16 %v3310_v7, %v3309_v15  ;;  %v6688_v8 = vld [vmem:[#allocation10_spill] sm:$0xff]  ;;  %v3385_v4 = vld [vmem:[%s6545_s1 + $0x450] sm:$0xff]  ;;  %v6696_v15 = vld [vmem:[#allocation17_spill] sm:$0xff] }
  0xad   : > { %3984 = vmatmul.mubr.f32.gmra.mrb[30].mxu1 %v5859_v39  ;;  %v6697_v7 = vld [vmem:[#allocation18_spill] sm:$0xff] }
  0xae   : > { %4360 = vmatmul.mubr.f32.gmra.mrb[14].mxu0 %v5638_v58  ;;  %4018 = vmatprep.mubr.f32.mxu1 %v923_v56  ;;  %v4650_v58 = vpack.c.bf16 %v3300_v44, %v3299_v13  ;;  %v3378_v56 = vld [vmem:[%s6545_s1 + $0x418] sm:$0xff]  ;;  %v3380_v13 = vld [vmem:[%s6545_s1 + $0x428] sm:$0xff] }
  0xaf   : > { %4362 = vmatprep.mubr.f32.mxu0 %v5671_v10  ;;  %4801 = vmatpush3.bf16.msra.mxu0 %v4798_v52  ;;  %v3301_v10 = vld [vmem:[%s6545_s1 + $0x1b0] sm:$0xff]  ;;  %v6259_v52 = vld [vmem:[%s5283_s28 + $0x198] sm:$0xff]  ;;  %v4806_v59 = vpack.c.bf16 %v3378_v56, %v3377_v1  ;;  %v6690_v44 = vld [vmem:[#allocation11_spill] sm:$0xff] }
  0xb0   : > { %4803 = vmatprep.subr.bf16.mxu0 %v6185_v29  ;;  %v3387_v1 = vld [vmem:[%s6545_s1 + $0x460] sm:$0xff]  ;;  %v3388_v56 = vld [vmem:[%s6545_s1 + $0x468] sm:$0xff] }
  0xb1   : > { %4019 = vmatmul.mubr.f32.vlgmr.msra.gmra.mrb[0].mxu1 %v925_v0  ;;  %v6689_v0 = vld [vmem:[#allocation2_spill] sm:$0xff] }
  0xb2   : > { %4363 = vmatmul.mubr.f32.gmra.mrb[16].mxu0 %v5674_v17  ;;  %4645 = vmatpush3.bf16.msra.mxu1 %v6097_v21  ;;  %v6679_v17 = vld [vmem:[#allocation25_spill] sm:$0xff]  ;;  %v3304_v21 = vld [vmem:[%s6545_s1 + $0x1c8] sm:$0xff] }
  0xb3   : > { %4021 = vmatprep.mubr.f32.mxu1 %v5666_v45  ;;  %4365 = vmatprep.mubr.f32.mxu0 %v5707_v62  ;;  %v4654_v45 = vpack.c.bf16 %v3302_v14, %v3301_v10  ;;  %v6680_v62 = vld [vmem:[#allocation27_spill] sm:$0xff]  ;;  %v3381_v14 = vld [vmem:[%s6545_s1 + $0x430] sm:$0xff] }
  0xb4   : > { %4647 = vmatprep.subr.bf16.mxu1 %v4646_v2 }
  0xb5   : > { %4022 = vmatmul.mubr.f32.gmra.mrb[2].mxu1 %v5691_v48  ;;  %v3303_v48 = vld [vmem:[%s6545_s1 + $0x1c0] sm:$0xff] }
  0xb6   : > { %4366 = vmatmul.mubr.f32.gmra.mrb[18].mxu0 %v5710_v18  ;;  %4024 = vmatprep.mubr.f32.mxu1 %v6679_v17  ;;  %v6681_v18 = vld [vmem:[#allocation29_spill] sm:$0xff] }
  0xb7   : > { %4368 = vmatprep.mubr.f32.mxu0 %v5745_v23  ;;  %4649 = vmatpush3.bf16.msra.mxu1 %v4646_v2  ;;  %v4658_v23 = vpack.c.bf16 %v3304_v21, %v3303_v48  ;;  %v3379_v2 = vld [vmem:[%s6545_s1 + $0x420] sm:$0xff]  ;;  %v6692_v48 = vld [vmem:[#allocation13_spill] sm:$0xff] }
  0xb8   : > { %4651 = vmatprep.subr.bf16.mxu1 %v4650_v58  ;;  %v4810_v10 = vpack.c.bf16 %v3380_v13, %v3379_v2  ;;  %v6693_v21 = vld [vmem:[#allocation14_spill] sm:$0xff]  ;;  %v4826_v2 = vpack.c.bf16 %v3388_v56, %v3387_v1  ;;  %v6700_v13 = vld [vmem:[#allocation47_spill] sm:$0xff]  ;;  %v6712_v56 = vld [vmem:[#allocation36_spill] sm:$0xff] }
  0xb9   : > { %4025 = vmatmul.mubr.f32.gmra.mrb[4].mxu1 %v6680_v62  ;;  %v5138_v1 = vld [vmem:[%s5283_s28 + $0x48] sm:$0xff] }
  0xba   : > { %4369 = vmatmul.mubr.f32.gmra.mrb[20].mxu0 %v5748_v46  ;;  %4027 = vmatprep.mubr.f32.mxu1 %v6681_v18  ;;  %v6683_v46 = vld [vmem:[#allocation33_spill] sm:$0xff] }
  0xbb   : > { %4371 = vmatprep.mubr.f32.mxu0 %v5782_v3  ;;  %4653 = vmatpush3.bf16.msra.mxu1 %v4650_v58  ;;  %v6691_v58 = vld [vmem:[#allocation12_spill] sm:$0xff] }
  0xbc   : > { %4655 = vmatprep.subr.bf16.mxu1 %v4654_v45 }
  0xbd   : > { %4028 = vmatmul.mubr.f32.gmra.mrb[6].mxu1 %v6682_v34 }
  0xbe   : > { %4372 = vmatmul.mubr.f32.gmra.mrb[22].mxu0 %v5785_v9  ;;  %4030 = vmatprep.mubr.f32.mxu1 %v6683_v46 }
  0xbf   : > { %4374 = vmatprep.mubr.f32.mxu0 %v5819_v25  ;;  %4657 = vmatpush3.bf16.msra.mxu1 %v4654_v45  ;;  %v3382_v45 = vld [vmem:[%s6545_s1 + $0x438] sm:$0xff] }
  0xc0   : > { %4659 = vmatprep.subr.bf16.mxu1 %v4658_v23 }
  0xc1   : > { %4031 = vmatmul.mubr.f32.gmra.mrb[8].mxu1 %v6684_v16 }
  0xc2   : > { %4375 = vmatmul.mubr.f32.gmra.mrb[24].mxu0 %v5822_v57  ;;  %4033 = vmatprep.mubr.f32.mxu1 %v6685_v51 }
  0xc3   : > { %4377 = vmatprep.mubr.f32.mxu0 %v5856_v12  ;;  %4661 = vmatpush3.bf16.msra.mxu1 %v4658_v23  ;;  %v3383_v23 = vld [vmem:[%s6545_s1 + $0x440] sm:$0xff] }
  0xc4   : > { %4663 = vmatprep.subr.bf16.mxu1 %v4662_v49  ;;  %v4818_v50 = vpack.c.bf16 %v3384_v31, %v3383_v23  ;;  %v6706_v23 = vld [vmem:[#allocation26_spill] sm:$0xff]  ;;  %v5134_v31 = vld [vmem:[%s5283_s28 + $0x18] sm:$0xff] }
  0xc5   : > { %4034 = vmatmul.mubr.f32.gmra.mrb[10].mxu1 %v6686_v26 }
  0xc6   : > { %4378 = vmatmul.mubr.f32.gmra.mrb[26].mxu0 %v5859_v39  ;;  %4036 = vmatprep.mubr.f32.mxu1 %v5851_v20 }
  0xc7   : > { %4380 = vmatprep.mubr.f32.mxu0 %v6040_v61  ;;  %4665 = vmatpush3.bf16.msra.mxu1 %v4662_v49  ;;  %v6695_v49 = vld [vmem:[#allocation16_spill] sm:$0xff] }
  0xc8   : > { %4667 = vmatprep.subr.bf16.mxu1 %v4666_v5 }
  0xc9   : > { %4037 = vmatmul.mubr.f32.gmra.mrb[12].mxu1 %v6687_v30 }
  0xca   : > { %4381 = vmatmul.mubr.f32.gmra.mrb[28].mxu0 %v6044_v41  ;;  %4039 = vmatprep.mubr.f32.mxu1 %v5888_v11 }
  0xcb   : > { %4383 = vmatprep.mubr.f32.mxu0 %v6259_v52  ;;  %4669 = vmatpush3.bf16.msra.mxu1 %v4666_v5  ;;  %v3386_v5 = vld [vmem:[%s6545_s1 + $0x458] sm:$0xff] }
  0xcc   : > { %4671 = vmatprep.subr.bf16.mxu1 %v4670_v38 }
  0xcd   : > { %4040 = vmatmul.mubr.f32.gmra.mrb[14].mxu1 %v5907_v43 }
  0xce   : > { %4384 = vmatmul.mubr.f32.gmra.mrb[30].mxu0 %v6266_v27  ;;  %4042 = vmatprep.mubr.f32.mxu1 %v5914_v19 }
  0xcf   : > { %4418 = vmatprep.mubr.f32.mxu0 %v6688_v8  ;;  %4673 = vmatpush3.bf16.msra.mxu1 %v4670_v38  ;;  %v4822_v38 = vpack.c.bf16 %v3386_v5, %v3385_v4  ;;  %v6698_v8 = vld [vmem:[#allocation19_spill] sm:$0xff]  ;;  %v5136_v4 = vld [vmem:[%s5283_s28 + $0x30] sm:$0xff] }
  0xd0   : > { %4834 = vmatprep.subr.bf16.mxu1 %v6689_v0  ;;  %v6709_v5 = vld [vmem:[#allocation32_spill] sm:$0xff] }
  0xd1   : > { %4043 = vmatmul.mubr.f32.gmra.mrb[16].mxu1 %v5932_v6 }
  0xd2   : > { %4419 = vmatmul.mubr.f32.vlgmr.msra.gmra.mrb[0].mxu0 %v6690_v44  ;;  %4045 = vmatprep.mubr.f32.mxu1 %v5936_v33  ;;  %v3389_v44 = vld [vmem:[%s6545_s1 + $0x470] sm:$0xff] }
  0xd3   : > { %4805 = vmatpush3.bf16.msra.mxu0 %v6185_v29  ;;  %4421 = vmatprep.mubr.f32.mxu0 %v6691_v58  ;;  %v4814_v29 = vpack.c.bf16 %v3382_v45, %v3381_v14  ;;  %v3390_v58 = vld [vmem:[%s6545_s1 + $0x478] sm:$0xff]  ;;  %v6702_v14 = vld [vmem:[#allocation22_spill] sm:$0xff] }
  0xd4   : > { %4807 = vmatprep.subr.bf16.mxu0 %v4806_v59  ;;  %v4830_v45 = vpack.c.bf16 %v3390_v58, %v3389_v44  ;;  %v6715_v44 = vld [vmem:[#allocation40_spill] sm:$0xff]  ;;  %v6716_v58 = vld [vmem:[#allocation5_spill] sm:$0xff] }
  0xd5   : > { %4046 = vmatmul.mubr.f32.gmra.mrb[18].mxu1 %v5953_v37 }
  0xd6   : > { %4422 = vmatmul.mubr.f32.gmra.mrb[2].mxu0 %v6692_v48  ;;  %4048 = vmatprep.mubr.f32.mxu1 %v5957_v53  ;;  %v6703_v48 = vld [vmem:[#allocation23_spill] sm:$0xff] }
  0xd7   : > { %4424 = vmatprep.mubr.f32.mxu0 %v6693_v21  ;;  %4809 = vmatpush3.bf16.msra.mxu0 %v4806_v59  ;;  %v6699_v59 = vld [vmem:[#allocation20_spill] sm:$0xff] }
  0xd8   : > { %4811 = vmatprep.subr.bf16.mxu0 %v4810_v10  ;;  %v6704_v21 = vld [vmem:[#allocation48_spill] sm:$0xff] }
  0xd9   : > { %4049 = vmatmul.mubr.f32.gmra.mrb[20].mxu1 %v5974_v36 }
  0xda   : > { %4425 = vmatmul.mubr.f32.gmra.mrb[4].mxu0 %v6694_v35  ;;  %4051 = vmatprep.mubr.f32.mxu1 %v5978_v24  ;;  %v6707_v35 = vld [vmem:[#allocation28_spill] sm:$0xff] }
  0xdb   : > { %4427 = vmatprep.mubr.f32.mxu0 %v6695_v49  ;;  %4813 = vmatpush3.bf16.msra.mxu0 %v4810_v10  ;;  %v6701_v10 = vld [vmem:[#allocation21_spill] sm:$0xff]  ;;  %v5135_v49 = vld [vmem:[%s5283_s28 + $0x20] sm:$0xff] }
  0xdc   : > { %4815 = vmatprep.subr.bf16.mxu0 %v4814_v29 }
  0xdd   : > { %4052 = vmatmul.mubr.f32.gmra.mrb[22].mxu1 %v5993_v40 }
  0xde   : > { %4428 = vmatmul.mubr.f32.gmra.mrb[6].mxu0 %v6696_v15  ;;  %4054 = vmatprep.mubr.f32.mxu1 %v5997_v60  ;;  %v6710_v15 = vld [vmem:[#allocation3_spill] sm:$0xff] }
  0xdf   : > { %4430 = vmatprep.mubr.f32.mxu0 %v6697_v7  ;;  %4817 = vmatpush3.bf16.msra.mxu0 %v4814_v29  ;;  %v6705_v29 = vld [vmem:[#allocation24_spill] sm:$0xff]  ;;  %v5137_v7 = vld [vmem:[%s5283_s28 + $0x38] sm:$0xff] }
  0xe0   : > { %4819 = vmatprep.subr.bf16.mxu0 %v4818_v50 }
  0xe1   : > { %4055 = vmatmul.mubr.f32.gmra.mrb[24].mxu1 %v6012_v55 }
  0xe2   : > { %4431 = vmatmul.mubr.f32.gmra.mrb[8].mxu0 %v6698_v8  ;;  %4057 = vmatprep.mubr.f32.mxu1 %v6016_v28  ;;  %v5139_v8 = vld [vmem:[%s5283_s28 + $0x50] sm:$0xff] }
  0xe3   : > { %4433 = vmatprep.mubr.f32.mxu0 %v6699_v59  ;;  %4821 = vmatpush3.bf16.msra.mxu0 %v4818_v50  ;;  %v6708_v50 = vld [vmem:[#allocation30_spill] sm:$0xff] }
  0xe4   : > { %4823 = vmatprep.subr.bf16.mxu0 %v4822_v38  ;;  %v6714_v59 = vld [vmem:[#allocation38_spill] sm:$0xff] }
  0xe5   : > { %4058 = vmatmul.mubr.f32.gmra.mrb[26].mxu1 %v6700_v13 }
  0xe6   : > { %4434 = vmatmul.mubr.f32.gmra.mrb[10].mxu0 %v6701_v10  ;;  %4060 = vmatprep.mubr.f32.mxu1 %v6035_v54  ;;  %v5141_v10 = vld [vmem:[%s5283_s28 + $0x68] sm:$0xff] }
  0xe7   : > { %4436 = vmatprep.mubr.f32.mxu0 %v6702_v14  ;;  %4825 = vmatpush3.bf16.msra.mxu0 %v4822_v38  ;;  %v6711_v38 = vld [vmem:[#allocation34_spill] sm:$0xff]  ;;  %v6717_v14 = vld [vmem:[#allocation41_spill] sm:$0xff] }
  0xe8   : > { %4827 = vmatprep.subr.bf16.mxu0 %v4826_v2 }
  0xe9   : > { %4061 = vmatmul.mubr.f32.gmra.mrb[28].mxu1 %v6056_v47 }
  0xea   : > { %4437 = vmatmul.mubr.f32.gmra.mrb[12].mxu0 %v6703_v48  ;;  %4063 = vmatprep.mubr.f32.mxu1 %v6704_v21  ;;  %v6718_v48 = vld [vmem:[#allocation43_spill] sm:$0xff] }
  0xeb   : > { %4439 = vmatprep.mubr.f32.mxu0 %v6705_v29  ;;  %4829 = vmatpush3.bf16.msra.mxu0 %v4826_v2  ;;  %v5140_v2 = vld [vmem:[%s5283_s28 + $0x60] sm:$0xff] }
  0xec   : > { %4831 = vmatprep.subr.bf16.mxu0 %v4830_v45 }
  0xed   : > { %4064 = vmatmul.mubr.f32.gmra.mrb[30].mxu1 %v6078_v22 }
  0xee   : > { %4440 = vmatmul.mubr.f32.gmra.mrb[14].mxu0 %v6706_v23  ;;  %4098 = vmatprep.mubr.f32.mxu1 %v5134_v31  ;;  %v1584_v31 = vrot.slane %v6040_v61, 1 }
  0xef   : > { %4442 = vmatprep.mubr.f32.mxu0 %v6707_v35  ;;  %4833 = vmatpush3.bf16.msra.mxu0 %v4830_v45  ;;  %v5142_v45 = vld [vmem:[%s5283_s28 + $0x78] sm:$0xff] }
  0xf1   : > { %4099 = vmatmul.mubr.f32.vlgmr.msra.gmra.mrb[0].mxu1 %v5135_v49  ;;  %v1585_v49 = vrot.slane %v6044_v41, 1 }
  0xf2   : > { %4443 = vmatmul.mubr.f32.gmra.mrb[16].mxu0 %v6708_v50  ;;  %4842 = vmatpush3.bf16.msra.mxu1 %v6689_v0  ;;  %v6713_v0 = vld [vmem:[#allocation4_spill] sm:$0xff] }
  0xf3   : > { %4101 = vmatprep.mubr.f32.mxu1 %v5136_v4  ;;  %4445 = vmatprep.mubr.f32.mxu0 %v6709_v5  ;;  %v6719_v4 = vld [vmem:[#allocation6_spill] sm:$0xff] }
  0xf4   : > { %4835 = vmatprep.subr.bf16.mxu1 %v6710_v15 }
  0xf5   : > { %4102 = vmatmul.mubr.f32.gmra.mrb[2].mxu1 %v5137_v7  ;;  %v6720_v7 = vld [vmem:[#allocation44_spill] sm:$0xff] }
  0xf6   : > { %4446 = vmatmul.mubr.f32.gmra.mrb[18].mxu0 %v6711_v38  ;;  %4104 = vmatprep.mubr.f32.mxu1 %v5138_v1  ;;  %v5144_v1 = vld [vmem:[%s5283_s28 + $0x90] sm:$0xff] }
  0xf7   : > { %4448 = vmatprep.mubr.f32.mxu0 %v6712_v56  ;;  %4843 = vmatpush3.bf16.msra.mxu1 %v6710_v15  ;;  %v5143_v15 = vld [vmem:[%s5283_s28 + $0x80] sm:$0xff] }
  0xf8   : > { %4836 = vmatprep.subr.bf16.mxu1 %v6713_v0 }
  0xf9   : > { %4105 = vmatmul.mubr.f32.gmra.mrb[4].mxu1 %v5139_v8  ;;  %v1587_v8 = vrot.slane %v6065_v63, 1  ;;  %v5146_v63 = vld [vmem:[%s5283_s28 + $0xa8] sm:$0xff] }
  0xfa   : > { %4449 = vmatmul.mubr.f32.gmra.mrb[20].mxu0 %v6714_v59  ;;  %4107 = vmatprep.mubr.f32.mxu1 %v5140_v2  ;;  %v2423_v2 = vrot.slane %v6259_v52, 1 }
  0xfb   : > { %4451 = vmatprep.mubr.f32.mxu0 %v6715_v44  ;;  %4844 = vmatpush3.bf16.msra.mxu1 %v6713_v0  ;;  %v6721_v0 = vld [vmem:[#allocation45_spill] sm:$0xff] }
  0xfc   : > { %4837 = vmatprep.subr.bf16.mxu1 %v6716_v58 }
  0xfd   : > { %4108 = vmatmul.mubr.f32.gmra.mrb[6].mxu1 %v5141_v10  ;;  %v6383_v10 = vsel %vm340_vm0, %v1584_v31, %v1585_v49 }
  0xfe   : > { %4452 = vmatmul.mubr.f32.gmra.mrb[22].mxu0 %v6717_v14  ;;  %4110 = vmatprep.mubr.f32.mxu1 %v5142_v45  ;;  %v6386_v45 = vld [vmem:[%s5283_s28 + $0x1a8] sm:$0x3] }
  0xff   : > { %4454 = vmatprep.mubr.f32.mxu0 %v6718_v48  ;;  %4845 = vmatpush3.bf16.msra.mxu1 %v6716_v58  ;;  %v2424_v58 = vrot.slane %v6266_v27, 1  ;;  %v2426_v31 = vrot.slane %v6386_v45, 1 }
 0x100   : > { %4838 = vmatprep.subr.bf16.mxu1 %v6719_v4 }
 0x101   : > { %4111 = vmatmul.mubr.f32.gmra.mrb[8].mxu1 %v5143_v15  ;;  %v6722_v15 = vld [vmem:[#allocation7_spill] sm:$0xff]  ;;  %v2425_v32 = vsel %vm340_vm0, %v2423_v2, %v2424_v58  ;;  %v5150_v2 = vld [vmem:[%s5283_s28 + $0xd8] sm:$0xff] }
 0x102   : > { %4455 = vmatmul.mubr.f32.gmra.mrb[24].mxu0 %v6720_v7  ;;  %4113 = vmatprep.mubr.f32.mxu1 %v5144_v1  ;;  %v5145_v1 = vld [vmem:[%s5283_s28 + $0x98] sm:$0xff] }
 0x103   : > { %4457 = vmatprep.mubr.f32.mxu0 %v6721_v0  ;;  %4846 = vmatpush3.bf16.msra.mxu1 %v6719_v4  ;;  %v6394_v4 = vsel %vm340_vm0, %v1585_v49, %v1587_v8  ;;  %v6724_v0 = vld [vmem:[#allocation8_spill] sm:$0xff]  ;;  %v2427_v49 = vsel %vm340_vm0, %v2424_v58, %v2426_v31  ;;  %v6725_v8 = vld [vmem:[#allocation9_spill] sm:$0xff]  ;;  %v5154_v31 = vld [vmem:[%s5283_s28 + $0x108] sm:$0xff] }
 0x104   : > { %4839 = vmatprep.subr.bf16.mxu1 %v6722_v15  ;;  %v5153_v58 = vld [vmem:[%s5283_s28 + $0xf8] sm:$0xff] }
 0x105   : > { %4114 = vmatmul.mubr.f32.gmra.mrb[10].mxu1 %v5145_v1  ;;  %v5147_v1 = vld [vmem:[%s5283_s28 + $0xb0] sm:$0xff] }
 0x106   : > { %4458 = vmatmul.mubr.f32.gmra.mrb[26].mxu0 %v6723_v42  ;;  %4116 = vmatprep.mubr.f32.mxu1 %v5146_v63  ;;  %v5148_v63 = vld [vmem:[%s5283_s28 + $0xc0] sm:$0xff] }
 0x107   : > { %4460 = vmatprep.mubr.f32.mxu0 %v6383_v10  ;;  %4847 = vmatpush3.bf16.msra.mxu1 %v6722_v15  ;;  %v5149_v15 = vld [vmem:[%s5283_s28 + $0xc8] sm:$0xff] }
 0x108   : > { %4840 = vmatprep.subr.bf16.mxu1 %v6724_v0 }
 0x109   : > { %4117 = vmatmul.mubr.f32.gmra.mrb[12].mxu1 %v5147_v1  ;;  %v5156_v1 = vld [vmem:[%s5283_s28 + $0x120] sm:$0xff] }
 0x10a   : > { %4461 = vmatmul.mubr.f32.gmra.mrb[28].mxu0 %v6394_v4  ;;  %4119 = vmatprep.mubr.f32.mxu1 %v5148_v63 }
 0x10b   : > { %4463 = vmatprep.mubr.f32.mxu0 %v2425_v32  ;;  %4848 = vmatpush3.bf16.msra.mxu1 %v6724_v0  ;;  %v5151_v32 = vld [vmem:[%s5283_s28 + $0xe0] sm:$0xff]  ;;  %v5152_v0 = vld [vmem:[%s5283_s28 + $0xf0] sm:$0xff] }
 0x10c   : > { %4841 = vmatprep.subr.bf16.mxu1 %v6725_v8 }
 0x10d   : > { %4120 = vmatmul.mubr.f32.gmra.mrb[14].mxu1 %v5149_v15 }
 0x10e   : > { %4464 = vmatmul.mubr.f32.gmra.mrb[30].mxu0 %v2427_v49  ;;  %4122 = vmatprep.mubr.f32.mxu1 %v5150_v2 }
 0x10f   : > { %4498 = vmatprep.mubr.f32.mxu0 %v6679_v17  ;;  %4849 = vmatpush3.bf16.msra.mxu1 %v6725_v8  ;;  %v5155_v17 = vld [vmem:[%s5283_s28 + $0x110] sm:$0xff] }
 0x111   : > { %4123 = vmatmul.mubr.f32.gmra.mrb[16].mxu1 %v5151_v32 }
 0x112   : > { %4499 = vmatmul.mubr.f32.vlgmr.msra.gmra.mrb[0].mxu0 %v6680_v62  ;;  %4125 = vmatprep.mubr.f32.mxu1 %v5152_v0  ;;  %v5157_v62 = vld [vmem:[%s5283_s28 + $0x128] sm:$0xff]  ;;  %s3393_s28 = sshll.u32 %s6734_s12, 8 }
 0x113   : > { %4501 = vmatprep.mubr.f32.mxu0 %v6681_v18  ;;  %s6491_s22 = scalar_lea.vmem %s6546_s2, %s3393_s28 }
 0x115   : > { %4126 = vmatmul.mubr.f32.gmra.mrb[18].mxu1 %v5153_v58 }
 0x116   : > { %4502 = vmatmul.mubr.f32.gmra.mrb[2].mxu0 %v6682_v34  ;;  %4128 = vmatprep.mubr.f32.mxu1 %v5154_v31 }
 0x117   : > { %4504 = vmatprep.mubr.f32.mxu0 %v6683_v46 }
 0x119   : > { %4129 = vmatmul.mubr.f32.gmra.mrb[20].mxu1 %v5155_v17 }
 0x11a   : > { %4505 = vmatmul.mubr.f32.gmra.mrb[4].mxu0 %v6684_v16  ;;  %4131 = vmatprep.mubr.f32.mxu1 %v5156_v1 }
 0x11b   : > { %4507 = vmatprep.mubr.f32.mxu0 %v6685_v51 }
 0x11d   : > { %4132 = vmatmul.mubr.f32.gmra.mrb[22].mxu1 %v5157_v62 }
 0x11e   : > { %4508 = vmatmul.mubr.f32.gmra.mrb[6].mxu0 %v6686_v26  ;;  %4134 = vmatprep.mubr.f32.mxu1 %v5782_v3  ;;  %v2705_v3 = vrot.slane %v6266_v27, 2 }
 0x11f   : > { %4510 = vmatprep.mubr.f32.mxu0 %v5851_v20  ;;  %v6728_v20 = vld [vmem:[#allocation50_spill] sm:$0xff] }
 0x121   : > { %4135 = vmatmul.mubr.f32.gmra.mrb[24].mxu1 %v5785_v9  ;;  %v6726_v9 = vld [vmem:[#allocation45_spill] sm:$0xff] }
 0x122   : > { %4511 = vmatmul.mubr.f32.gmra.mrb[8].mxu0 %v6687_v30  ;;  %4137 = vmatprep.mubr.f32.mxu1 %v5819_v25  ;;  %v2707_v25 = vrot.slane %v6386_v45, 2 }
 0x123   : > { %4513 = vmatprep.mubr.f32.mxu0 %v5888_v11 }
 0x125   : > { %4138 = vmatmul.mubr.f32.gmra.mrb[26].mxu1 %v5822_v57 }
 0x126   : > { %4514 = vmatmul.mubr.f32.gmra.mrb[10].mxu0 %v5907_v43  ;;  %4140 = vmatprep.mubr.f32.mxu1 %v5856_v12  ;;  %v6727_v12 = vld [vmem:[#allocation49_spill] sm:$0xff] }
 0x127   : > { %4516 = vmatprep.mubr.f32.mxu0 %v5914_v19  ;;  %v2704_v19 = vrot.slane %v6259_v52, 2 }
 0x129   : > { %4141 = vmatmul.mubr.f32.gmra.mrb[28].mxu1 %v5859_v39  ;;  %v2706_v57 = vsel %vm920_vm1, %v2704_v19, %v2705_v3  ;;  %v2708_v39 = vsel %vm920_vm1, %v2705_v3, %v2707_v25 }
 0x12a   : > { %4517 = vmatmul.mubr.f32.gmra.mrb[12].mxu0 %v5932_v6  ;;  %4143 = vmatprep.mubr.f32.mxu1 %v6040_v61 }
 0x12b   : > { %4519 = vmatprep.mubr.f32.mxu0 %v5936_v33 }
 0x12d   : > { %4144 = vmatmul.mubr.f32.gmra.mrb[30].mxu1 %v6044_v41 }
 0x12e   : > { %4520 = vmatmul.mubr.f32.gmra.mrb[14].mxu0 %v5953_v37  ;;  %4202 = vmatprep.mubr.f32.mxu1 %v6705_v29 }
 0x12f   : > { %4522 = vmatprep.mubr.f32.mxu0 %v5957_v53 }
 0x131   : > { %4203 = vmatmul.mubr.f32.vlgmr.msra.gmra.mrb[16].mxu1 %v6706_v23 }
 0x132   : > { %4523 = vmatmul.mubr.f32.gmra.mrb[16].mxu0 %v5974_v36  ;;  %4205 = vmatprep.mubr.f32.mxu1 %v6707_v35 }
 0x133   : > { %4525 = vmatprep.mubr.f32.mxu0 %v5978_v24 }
 0x135   : > { %4206 = vmatmul.mubr.f32.gmra.mrb[18].mxu1 %v6708_v50 }
 0x136   : > { %4526 = vmatmul.mubr.f32.gmra.mrb[18].mxu0 %v5993_v40  ;;  %4208 = vmatprep.mubr.f32.mxu1 %v6709_v5 }
 0x137   : > { %4528 = vmatprep.mubr.f32.mxu0 %v5997_v60 }
 0x139   : > { %4209 = vmatmul.mubr.f32.gmra.mrb[20].mxu1 %v6711_v38 }
 0x13a   : > { %4529 = vmatmul.mubr.f32.gmra.mrb[20].mxu0 %v6012_v55  ;;  %4211 = vmatprep.mubr.f32.mxu1 %v6712_v56 }
 0x13b   : > { %4531 = vmatprep.mubr.f32.mxu0 %v6016_v28 }
 0x13d   : > { %4212 = vmatmul.mubr.f32.gmra.mrb[22].mxu1 %v6714_v59 }
 0x13e   : > { %4532 = vmatmul.mubr.f32.gmra.mrb[22].mxu0 %v6700_v13  ;;  %4214 = vmatprep.mubr.f32.mxu1 %v6715_v44 }
 0x13f   : > { %4534 = vmatprep.mubr.f32.mxu0 %v6035_v54 }
 0x141   : > { %4215 = vmatmul.mubr.f32.gmra.mrb[24].mxu1 %v6717_v14 }
 0x142   : > { %4535 = vmatmul.mubr.f32.gmra.mrb[24].mxu0 %v6056_v47  ;;  %4217 = vmatprep.mubr.f32.mxu1 %v6718_v48 }
 0x143   : > { %4537 = vmatprep.mubr.f32.mxu0 %v6704_v21 }
 0x145   : > { %4218 = vmatmul.mubr.f32.gmra.mrb[26].mxu1 %v6720_v7 }
 0x146   : > { %4538 = vmatmul.mubr.f32.gmra.mrb[26].mxu0 %v6078_v22  ;;  %4220 = vmatprep.mubr.f32.mxu1 %v6726_v9 }
 0x147   : > { %4540 = vmatprep.mubr.f32.mxu0 %v6727_v12 }
 0x149   : > { %4221 = vmatmul.mubr.f32.gmra.mrb[28].mxu1 %v6723_v42 }
 0x14a   : > { %4541 = vmatmul.mubr.f32.gmra.mrb[28].mxu0 %v6728_v20  ;;  %4223 = vmatprep.mubr.f32.mxu1 %v6383_v10 }
 0x14b   : > { %4543 = vmatprep.mubr.f32.mxu0 %v2706_v57 }
 0x14d   : > { %4224 = vmatmul.mubr.f32.gmra.mrb[30].mxu1 %v6394_v4 }
 0x14e   : > { %4544 = vmatmul.mubr.f32.gmra.mrb[30].mxu0 %v2708_v39 }
 0x1c4   : > { %v4100_v11 = vpop.f32.mrb[0].mxu1 }
 0x1c5   : > { %v1390_v43 = vpop.f32.mrb[1].mxu1 }
 0x1c8   : > { %v4103_v41 = vpop.f32.mrb[2].mxu1 }
 0x1c9   : > { %v1400_v6 = vpop.f32.mrb[3].mxu1 }
 0x1cc   : > { %v4106_v33 = vpop.f32.mrb[4].mxu1 }
 0x1cd   : > { %v1410_v37 = vpop.f32.mrb[5].mxu1 }
 0x1d0   : > { %v4109_v53 = vpop.f32.mrb[6].mxu1 }
 0x1d1   : > { %v1420_v36 = vpop.f32.mrb[7].mxu1 }
 0x1d4   : > { %v4112_v24 = vpop.f32.mrb[8].mxu1 }
 0x1d5   : > { %v1430_v40 = vpop.f32.mrb[9].mxu1 }
 0x1d8   : > { %v6475_v60 = vpop.f32.mrb[10].mxu1 }
 0x1d9   : > { %v6477_v55 = vpop.f32.mrb[11].mxu1 }
 0x1dc   : > { %v6479_v28 = vpop.f32.mrb[12].mxu1 }
 0x1dd   : > { %v6481_v54 = vpop.f32.mrb[13].mxu1 }
 0x1e0   : > { %v6483_v61 = vpop.f32.mrb[14].mxu1 }
 0x1e1   : > { %v6485_v47 = vpop.f32.mrb[15].mxu1 }
 0x1e5   : > { %v4500_v22 = vpop.f32.mrb[0].mxu0 }
 0x1e6   : > { %v4850_v42 = vadd.f32 %v4500_v22, %v4100_v11  ;;  %v2794_v18 = vpop.f32.mrb[1].mxu0 }
 0x1e7   : > { %v4851_v34 = vadd.f32 %v2794_v18, %v1390_v43 }
 0x1e8   : > { %2986 = vst [vmem:[%s6491_s22 + $0x8] sm:$0xff] %v4850_v42  ;;  %v3055_v46 = vmul.f32 %v4850_v42, %v4850_v42 }
 0x1e9   : > { %2985 = vst [vmem:[%s6491_s22] sm:$0xff] %v4851_v34  ;;  %v3017_v16 = vadd.f32 %v4851_v34, %v4850_v42  ;;  %v3054_v51 = vmul.f32 %v4851_v34, %v4851_v34  ;;  %v4503_v26 = vpop.f32.mrb[2].mxu0 }
 0x1ea   : > { %v4852_v52 = vadd.f32 %v4503_v26, %v4103_v41  ;;  %v2804_v30 = vpop.f32.mrb[3].mxu0 }
 0x1eb   : > { %v3086_v27 = vadd.f32 %v3055_v46, %v3054_v51  ;;  %v4853_v13 = vadd.f32 %v2804_v30, %v1400_v6 }
 0x1ec   : > { %2988 = vst [vmem:[%s6491_s22 + $0x18] sm:$0xff] %v4852_v52  ;;  %v3057_v5 = vmul.f32 %v4852_v52, %v4852_v52 }
 0x1ed   : > { %2987 = vst [vmem:[%s6491_s22 + $0x10] sm:$0xff] %v4853_v13  ;;  %v3018_v21 = vadd.f32 %v4853_v13, %v3017_v16  ;;  %v3056_v29 = vmul.f32 %v4853_v13, %v4853_v13  ;;  %v4506_v23 = vpop.f32.mrb[4].mxu0 }
 0x1ee   : > { %v4854_v35 = vadd.f32 %v4506_v23, %v4106_v33  ;;  %v2814_v50 = vpop.f32.mrb[5].mxu0 }
 0x1ef   : > { %v3087_v38 = vadd.f32 %v3086_v27, %v3056_v29  ;;  %v4855_v56 = vadd.f32 %v2814_v50, %v1410_v37  ;;  %v3019_v59 = vadd.f32 %v4852_v52, %v3018_v21 }
 0x1f0   : > { %2990 = vst [vmem:[%s6491_s22 + $0x28] sm:$0xff] %v4854_v35  ;;  %v3059_v4 = vmul.f32 %v4854_v35, %v4854_v35 }
 0x1f1   : > { %2989 = vst [vmem:[%s6491_s22 + $0x20] sm:$0xff] %v4855_v56  ;;  %v3020_v44 = vadd.f32 %v4855_v56, %v3019_v59  ;;  %v3058_v14 = vmul.f32 %v4855_v56, %v4855_v56  ;;  %v3088_v48 = vadd.f32 %v3087_v38, %v3057_v5  ;;  %v4509_v7 = vpop.f32.mrb[6].mxu0 }
 0x1f2   : > { %v4856_v10 = vadd.f32 %v4509_v7, %v4109_v53  ;;  %v2824_v45 = vpop.f32.mrb[7].mxu0 }
 0x1f3   : > { %v3089_v63 = vadd.f32 %v3088_v48, %v3058_v14  ;;  %v4857_v49 = vadd.f32 %v2824_v45, %v1420_v36  ;;  %v3021_v8 = vadd.f32 %v4854_v35, %v3020_v44 }
 0x1f4   : > { %2992 = vst [vmem:[%s6491_s22 + $0x38] sm:$0xff] %v4856_v10  ;;  %v3061_v17 = vmul.f32 %v4856_v10, %v4856_v10 }
 0x1f5   : > { %2991 = vst [vmem:[%s6491_s22 + $0x30] sm:$0xff] %v4857_v49  ;;  %v3022_v15 = vadd.f32 %v4857_v49, %v3021_v8  ;;  %v3060_v2 = vmul.f32 %v4857_v49, %v4857_v49  ;;  %v3090_v32 = vadd.f32 %v3089_v63, %v3059_v4  ;;  %v4512_v0 = vpop.f32.mrb[8].mxu0 }
 0x1f6   : > { %v4858_v58 = vadd.f32 %v4512_v0, %v4112_v24  ;;  %v2834_v31 = vpop.f32.mrb[9].mxu0 }
 0x1f7   : > { %v3091_v1 = vadd.f32 %v3090_v32, %v3060_v2  ;;  %v4859_v62 = vadd.f32 %v2834_v31, %v1430_v40  ;;  %v3023_v19 = vadd.f32 %v4856_v10, %v3022_v15 }
 0x1f8   : > { %2994 = vst [vmem:[%s6491_s22 + $0x48] sm:$0xff] %v4858_v58  ;;  %v3063_v39 = vmul.f32 %v4858_v58, %v4858_v58 }
 0x1f9   : > { %2993 = vst [vmem:[%s6491_s22 + $0x40] sm:$0xff] %v4859_v62  ;;  %v3024_v3 = vadd.f32 %v4859_v62, %v3023_v19  ;;  %v3062_v9 = vmul.f32 %v4859_v62, %v4859_v62  ;;  %v3092_v12 = vadd.f32 %v3091_v1, %v3061_v17  ;;  %v4515_v25 = vpop.f32.mrb[10].mxu0 }
 0x1fa   : > { %v4860_v57 = vadd.f32 %v4515_v25, %v6475_v60  ;;  %v2844_v20 = vpop.f32.mrb[11].mxu0 }
 0x1fb   : > { %v3093_v11 = vadd.f32 %v3092_v12, %v3062_v9  ;;  %v4861_v43 = vadd.f32 %v2844_v20, %v6477_v55  ;;  %v3025_v41 = vadd.f32 %v4858_v58, %v3024_v3 }
 0x1fc   : > { %2996 = vst [vmem:[%s6491_s22 + $0x58] sm:$0xff] %v4860_v57  ;;  %v3065_v40 = vmul.f32 %v4860_v57, %v4860_v57 }
 0x1fd   : > { %2995 = vst [vmem:[%s6491_s22 + $0x50] sm:$0xff] %v4861_v43  ;;  %v3026_v6 = vadd.f32 %v4861_v43, %v3025_v41  ;;  %v3064_v33 = vmul.f32 %v4861_v43, %v4861_v43  ;;  %v3094_v37 = vadd.f32 %v3093_v11, %v3063_v39  ;;  %v4518_v53 = vpop.f32.mrb[12].mxu0 }
 0x1fe   : > { %v4862_v36 = vadd.f32 %v4518_v53, %v6479_v28  ;;  %v2854_v24 = vpop.f32.mrb[13].mxu0 }
 0x1ff   : > { %v3095_v60 = vadd.f32 %v3094_v37, %v3064_v33  ;;  %v4863_v22 = vadd.f32 %v2854_v24, %v6481_v54  ;;  %v3027_v42 = vadd.f32 %v4860_v57, %v3026_v6 }
 0x200   : > { %2998 = vst [vmem:[%s6491_s22 + $0x68] sm:$0xff] %v4862_v36  ;;  %v3067_v26 = vmul.f32 %v4862_v36, %v4862_v36 }
 0x201   : > { %2997 = vst [vmem:[%s6491_s22 + $0x60] sm:$0xff] %v4863_v22  ;;  %v3028_v55 = vadd.f32 %v4863_v22, %v3027_v42  ;;  %v3066_v18 = vmul.f32 %v4863_v22, %v4863_v22  ;;  %v3096_v34 = vadd.f32 %v3095_v60, %v3065_v40  ;;  %v4521_v46 = vpop.f32.mrb[14].mxu0 }
 0x202   : > { %v4864_v16 = vadd.f32 %v4521_v46, %v6483_v61  ;;  %v2864_v51 = vpop.f32.mrb[15].mxu0 }
 0x203   : > { %v3097_v52 = vadd.f32 %v3096_v34, %v3066_v18  ;;  %v4865_v28 = vadd.f32 %v2864_v51, %v6485_v47  ;;  %v3029_v30 = vadd.f32 %v4862_v36, %v3028_v55 }
 0x204   : > { %3000 = vst [vmem:[%s6491_s22 + $0x78] sm:$0xff] %v4864_v16  ;;  %v4204_v54 = vpop.f32.mrb[16].mxu1  ;;  %v3069_v5 = vmul.f32 %v4864_v16, %v4864_v16 }
 0x205   : > { %2999 = vst [vmem:[%s6491_s22 + $0x70] sm:$0xff] %v4865_v28  ;;  %v3030_v27 = vadd.f32 %v4865_v28, %v3029_v30  ;;  %v3068_v13 = vmul.f32 %v4865_v28, %v4865_v28  ;;  %v3098_v21 = vadd.f32 %v3097_v52, %v3067_v26  ;;  %v4524_v29 = vpop.f32.mrb[16].mxu0  ;;  %v1754_v23 = vpop.f32.mrb[17].mxu1 }
 0x206   : > { %v4866_v35 = vadd.f32 %v4524_v29, %v4204_v54  ;;  %v2874_v50 = vpop.f32.mrb[17].mxu0 }
 0x207   : > { %v3099_v61 = vadd.f32 %v3098_v21, %v3068_v13  ;;  %v4867_v38 = vadd.f32 %v2874_v50, %v1754_v23  ;;  %v3031_v56 = vadd.f32 %v4864_v16, %v3030_v27 }
 0x208   : > { %3002 = vst [vmem:[%s6491_s22 + $0x88] sm:$0xff] %v4866_v35  ;;  %v4207_v47 = vpop.f32.mrb[18].mxu1  ;;  %v3071_v4 = vmul.f32 %v4866_v35, %v4866_v35 }
 0x209   : > { %3001 = vst [vmem:[%s6491_s22 + $0x80] sm:$0xff] %v4867_v38  ;;  %v3032_v59 = vadd.f32 %v4867_v38, %v3031_v56  ;;  %v3070_v44 = vmul.f32 %v4867_v38, %v4867_v38  ;;  %v3100_v14 = vadd.f32 %v3099_v61, %v3069_v5  ;;  %v4527_v48 = vpop.f32.mrb[18].mxu0  ;;  %v1764_v7 = vpop.f32.mrb[19].mxu1 }
 0x20a   : > { %v4868_v10 = vadd.f32 %v4527_v48, %v4207_v47  ;;  %v2884_v45 = vpop.f32.mrb[19].mxu0 }
 0x20b   : > { %v3101_v63 = vadd.f32 %v3100_v14, %v3070_v44  ;;  %v4869_v49 = vadd.f32 %v2884_v45, %v1764_v7  ;;  %v3033_v8 = vadd.f32 %v4866_v35, %v3032_v59 }
 0x20c   : > { %3004 = vst [vmem:[%s6491_s22 + $0x98] sm:$0xff] %v4868_v10  ;;  %v4210_v15 = vpop.f32.mrb[20].mxu1  ;;  %v3073_v62 = vmul.f32 %v4868_v10, %v4868_v10 }
 0x20d   : > { %3003 = vst [vmem:[%s6491_s22 + $0x90] sm:$0xff] %v4869_v49  ;;  %v3034_v2 = vadd.f32 %v4869_v49, %v3033_v8  ;;  %v3072_v32 = vmul.f32 %v4869_v49, %v4869_v49  ;;  %v3102_v0 = vadd.f32 %v3101_v63, %v3071_v4  ;;  %v4530_v58 = vpop.f32.mrb[20].mxu0  ;;  %v1774_v31 = vpop.f32.mrb[21].mxu1 }
 0x20e   : > { %v4870_v17 = vadd.f32 %v4530_v58, %v4210_v15  ;;  %v2894_v1 = vpop.f32.mrb[21].mxu0 }
 0x20f   : > { %v3103_v19 = vadd.f32 %v3102_v0, %v3072_v32  ;;  %v4871_v3 = vadd.f32 %v2894_v1, %v1774_v31  ;;  %v3035_v9 = vadd.f32 %v4868_v10, %v3034_v2 }
 0x210   : > { %3006 = vst [vmem:[%s6491_s22 + $0xa8] sm:$0xff] %v4870_v17  ;;  %v4213_v12 = vpop.f32.mrb[22].mxu1  ;;  %v3075_v6 = vmul.f32 %v4870_v17, %v4870_v17 }
 0x211   : > { %3005 = vst [vmem:[%s6491_s22 + $0xa0] sm:$0xff] %v4871_v3  ;;  %v3036_v25 = vadd.f32 %v4871_v3, %v3035_v9  ;;  %v3074_v57 = vmul.f32 %v4871_v3, %v4871_v3  ;;  %v3104_v20 = vadd.f32 %v3103_v19, %v3073_v62  ;;  %v4533_v39 = vpop.f32.mrb[22].mxu0  ;;  %v1784_v11 = vpop.f32.mrb[23].mxu1 }
 0x212   : > { %v4872_v43 = vadd.f32 %v4533_v39, %v4213_v12  ;;  %v2904_v41 = vpop.f32.mrb[23].mxu0 }
 0x213   : > { %v3105_v33 = vadd.f32 %v3104_v20, %v3074_v57  ;;  %v4873_v37 = vadd.f32 %v2904_v41, %v1784_v11  ;;  %v3037_v53 = vadd.f32 %v4870_v17, %v3036_v25 }
 0x214   : > { %3008 = vst [vmem:[%s6491_s22 + $0xb8] sm:$0xff] %v4872_v43  ;;  %v4216_v36 = vpop.f32.mrb[24].mxu1  ;;  %v3077_v34 = vmul.f32 %v4872_v43, %v4872_v43 }
 0x215   : > { %3007 = vst [vmem:[%s6491_s22 + $0xb0] sm:$0xff] %v4873_v37  ;;  %v3038_v24 = vadd.f32 %v4873_v37, %v3037_v53  ;;  %v3076_v40 = vmul.f32 %v4873_v37, %v4873_v37  ;;  %v3106_v60 = vadd.f32 %v3105_v33, %v3075_v6  ;;  %v4536_v22 = vpop.f32.mrb[24].mxu0  ;;  %v1794_v42 = vpop.f32.mrb[25].mxu1 }
 0x216   : > { %v4874_v55 = vadd.f32 %v4536_v22, %v4216_v36  ;;  %v2914_v18 = vpop.f32.mrb[25].mxu0 }
 0x217   : > { %v3107_v46 = vadd.f32 %v3106_v60, %v3076_v40  ;;  %v4875_v16 = vadd.f32 %v2914_v18, %v1794_v42  ;;  %v3039_v51 = vadd.f32 %v4872_v43, %v3038_v24 }
 0x218   : > { %3010 = vst [vmem:[%s6491_s22 + $0xc8] sm:$0xff] %v4874_v55  ;;  %v4219_v26 = vpop.f32.mrb[26].mxu1  ;;  %v3079_v29 = vmul.f32 %v4874_v55, %v4874_v55 }
 0x219   : > { %3009 = vst [vmem:[%s6491_s22 + $0xc0] sm:$0xff] %v4875_v16  ;;  %v3040_v52 = vadd.f32 %v4875_v16, %v3039_v51  ;;  %v3078_v28 = vmul.f32 %v4875_v16, %v4875_v16  ;;  %v3108_v30 = vadd.f32 %v3107_v46, %v3077_v34  ;;  %v4539_v54 = vpop.f32.mrb[26].mxu0  ;;  %v1804_v27 = vpop.f32.mrb[27].mxu1 }
 0x21a   : > { %v4876_v13 = vadd.f32 %v4539_v54, %v4219_v26  ;;  %v2924_v21 = vpop.f32.mrb[27].mxu0 }
 0x21b   : > { %v3109_v23 = vadd.f32 %v3108_v30, %v3078_v28  ;;  %v4877_v35 = vadd.f32 %v2924_v21, %v1804_v27  ;;  %v3041_v50 = vadd.f32 %v4874_v55, %v3040_v52 }
 0x21c   : > { %3012 = vst [vmem:[%s6491_s22 + $0xd8] sm:$0xff] %v4876_v13  ;;  %v4222_v5 = vpop.f32.mrb[28].mxu1  ;;  %v3081_v48 = vmul.f32 %v4876_v13, %v4876_v13 }
 0x21d   : > { %3011 = vst [vmem:[%s6491_s22 + $0xd0] sm:$0xff] %v4877_v35  ;;  %v3042_v61 = vadd.f32 %v4877_v35, %v3041_v50  ;;  %v3080_v38 = vmul.f32 %v4877_v35, %v4877_v35  ;;  %v3110_v56 = vadd.f32 %v3109_v23, %v3079_v29  ;;  %v4542_v47 = vpop.f32.mrb[28].mxu0  ;;  %v1814_v59 = vpop.f32.mrb[29].mxu1 }
 0x21e   : > { %v4878_v44 = vadd.f32 %v4542_v47, %v4222_v5  ;;  %v2934_v14 = vpop.f32.mrb[29].mxu0 }
 0x21f   : > { %v3111_v7 = vadd.f32 %v3110_v56, %v3080_v38  ;;  %v4879_v10 = vadd.f32 %v2934_v14, %v1814_v59  ;;  %v3043_v45 = vadd.f32 %v4876_v13, %v3042_v61 }
 0x220   : > { %3014 = vst [vmem:[%s6491_s22 + $0xe8] sm:$0xff] %v4878_v44  ;;  %v4225_v4 = vpop.f32.mrb[30].mxu1  ;;  %v3083_v58 = vmul.f32 %v4878_v44, %v4878_v44 }
 0x221   : > { %3013 = vst [vmem:[%s6491_s22 + $0xe0] sm:$0xff] %v4879_v10  ;;  %v3044_v63 = vadd.f32 %v4879_v10, %v3043_v45  ;;  %v3082_v49 = vmul.f32 %v4879_v10, %v4879_v10  ;;  %v3112_v8 = vadd.f32 %v3111_v7, %v3081_v48  ;;  %v4545_v15 = vpop.f32.mrb[30].mxu0  ;;  %v1824_v2 = vpop.f32.mrb[31].mxu1 }
 0x222   : > { %v4880_v32 = vadd.f32 %v4545_v15, %v4225_v4  ;;  %v2944_v0 = vpop.f32.mrb[31].mxu0 }
 0x223   : > { %v3113_v31 = vadd.f32 %v3112_v8, %v3082_v49  ;;  %v4881_v17 = vadd.f32 %v2944_v0, %v1824_v2  ;;  %v3045_v1 = vadd.f32 %v4878_v44, %v3044_v63 }
 0x224   : > { %3016 = vst [vmem:[%s6491_s22 + $0xf8] sm:$0xff] %v4880_v32  ;;  %v3085_v9 = vmul.f32 %v4880_v32, %v4880_v32 }
 0x225   : > { %3015 = vst [vmem:[%s6491_s22 + $0xf0] sm:$0xff] %v4881_v17  ;;  %v3046_v62 = vadd.f32 %v4881_v17, %v3045_v1  ;;  %v3084_v19 = vmul.f32 %v4881_v17, %v4881_v17  ;;  %v3114_v3 = vadd.f32 %v3113_v31, %v3083_v58 }
 0x227   : > { %v3047_v12 = vadd.f32 %v4880_v32, %v3046_v62  ;;  %v3115_v25 = vadd.f32 %v3114_v3, %v3084_v19 }
 0x229   : > { %v3048_v57 = vrot.slane %v3047_v12, 4  ;;  %v3116_v20 = vadd.f32 %v3115_v25, %v3085_v9 }
 0x22b   : > { %v3049_v39 = vadd.f32 %v3048_v57, %v3047_v12  ;;  %v3117_v11 = vrot.slane %v3116_v20, 4 }
 0x22d   : > { %v3050_v43 = vrot.slane %v3049_v39, 2  ;;  %v3118_v41 = vadd.f32 %v3117_v11, %v3116_v20 }
 0x22f   : > { %v3051_v6 = vadd.f32 %v3050_v43, %v3049_v39  ;;  %v3119_v33 = vrot.slane %v3118_v41, 2 }
 0x231   : > { %v3052_v37 = vrot.slane %v3051_v6, 1  ;;  %v3120_v53 = vadd.f32 %v3119_v33, %v3118_v41 }
 0x233   : > { %v3121_v36 = vrot.slane %v3120_v53, 1  ;;  %v3053_v24 = vadd.f32 %v3052_v37, %v3051_v6 }
 0x235   : > { %v3122_v40 = vadd.f32 %v3121_v36, %v3120_v53 }
 0x237   : > { %v3124_v60 = vsel %vm3123_vm2, %v3053_v24, %v3122_v40 }
 0x238   : > { %3125 = vst [vmem:[%s221_s26] sm:$0x3] %v3124_v60 }
 0x239 PF: > { %s14_s14 = sadd.s32 1, %s5180_s14   ;;  %s6729_s12 = smov %s5176_s13 }
 0x23a   : > { %p11_p5 = scmp.ge.s32.totalorder %s14_s14, 4   ;;  %s6730_s13 = smov %s6732_s15 }
 0x23c   :  { %13 = sbr.rel (!%p11_p5) target bundleno = 2 (0x2), region = 78 }

</bundles_post_ra>
